<compile_context>
chip_gen: v7x
topology: tpu7x:2x2x1
jax: 0.10.0
libtpu: 0.0.40
codegen_flags: <defaults>
</compile_context>

<pallas_src>
import jax
import jax.numpy as jnp
from jax.experimental import pallas as pl
from jax.experimental.pallas import tpu as pltpu

TAU = 1.25        # LIFNode(tau=1.25, decay_input=False, v_reset=0.0)
V_TH = 0.5        # v_threshold
BN_EPS = 1e-5     # torch BatchNorm2d default eps

_CONV_TILE_CAP = 2048      # pixel lanes per conv grid step (review: never tile = NHW)
_LIF_TILE_CAP = 8192       # pixel lanes per LIF grid step (review: >= 2048 lanes)
_VMEM_BUDGET = 24 * 2**20  # conservative working-set budget before shrinking tiles


# ------------------------------------------------------------------------- helpers
def _pick_tile(nhw, cap):
    """Largest multiple of 128 that divides nhw and is <= cap."""
    tile = max(128, min(nhw, cap))
    tile -= tile % 128
    while nhw % tile:
        tile -= 128
    return tile


def _tree_sum(blocks):
    """Pairwise tree reduction (shorter dependence chain than a serial fold)."""
    while len(blocks) > 1:
        nxt = [blocks[i] + blocks[i + 1] for i in range(0, len(blocks) - 1, 2)]
        if len(blocks) % 2:
            nxt.append(blocks[-1])
        blocks = nxt
    return blocks[0]


# --------------------------------------------------------------------------- kernels
def _conv_bn_kernel(w_ref, p_ref, y_ref, ssum_ref, ssq_ref):
    """One grid step: y[R, tile] = W[R, K] @ P[K, tile] (bf16 MXU, f32 accum),
    y stored as bf16, plus per-channel partial sum / sum-of-squares for the BN
    fold (tree-reduced over lane-aligned 128-wide blocks so the stats outputs
    stay (8, 128)-aligned).  Stats use the bf16-rounded values the LIF reads."""
    y = jnp.dot(w_ref[...], p_ref[0], preferred_element_type=jnp.float32)
    yb = y.astype(jnp.bfloat16)
    y_ref[0] = yb
    yf = yb.astype(jnp.float32)
    tile = yf.shape[1]
    n_fold = tile // 128
    sblk = [yf[:, i * 128:(i + 1) * 128] for i in range(n_fold)]
    qblk = [b * b for b in sblk]
    ssum_ref[0, 0] = _tree_sum(sblk)
    ssq_ref[0, 0] = _tree_sum(qblk)


def conv_bn_stats(wf, pf):
    """Fused multi-op two-branch 3x3 conv as an im2col matmul, transposed layout.

    wf: [R, K] bf16 block-diagonal weight (R = 2*n_ops*Cout, rows branch-major),
    pf: [T, K, NHW] bf16 patches.  Returns y [T, R, NHW] bf16 and BN partial
    statistics [T, n_m, R, 128] f32."""
    T, K, nhw = pf.shape
    R = wf.shape[0]
    assert nhw % 128 == 0, "N*H*W must be a multiple of 128 (lane width)"
    assert R % 8 == 0, "2*n_ops*Cout must be a multiple of 8 (sublane width)"

    def working_set(t):                      # bytes, double-buffered blocks
        return (R * K * 2                    # resident bf16 weights
                + 4 * K * t                  # 2x bf16 patch blocks
                + 4 * R * t                  # 2x bf16 y blocks
                + 16 * R * 128)              # 2x f32 stats blocks x2 outputs

    tile = _pick_tile(nhw, _CONV_TILE_CAP)
    while tile > 128 and working_set(tile) > _VMEM_BUDGET:
        tile = _pick_tile(nhw, tile - 128)
    n_m = nhw // tile
    vmem_limit = int(min(max(2 * working_set(tile), 32 * 2**20), 48 * 2**20))

    return pl.pallas_call(
        _conv_bn_kernel,
        out_shape=(jax.ShapeDtypeStruct((T, R, nhw), jnp.bfloat16),
                   jax.ShapeDtypeStruct((T, n_m, R, 128), jnp.float32),
                   jax.ShapeDtypeStruct((T, n_m, R, 128), jnp.float32)),
        grid_spec=pltpu.PrefetchScalarGridSpec(
            num_scalar_prefetch=0,
            grid=(T, n_m),
            in_specs=[
                pl.BlockSpec((R, K), lambda t, m: (0, 0)),        # weights resident
                pl.BlockSpec((1, K, tile), lambda t, m: (t, 0, m)),
            ],
            out_specs=[
                pl.BlockSpec((1, R, tile), lambda t, m: (t, 0, m)),
                pl.BlockSpec((1, 1, R, 128), lambda t, m: (t, m, 0, 0)),
                pl.BlockSpec((1, 1, R, 128), lambda t, m: (t, m, 0, 0)),
            ],
        ),
        compiler_params=pltpu.CompilerParams(
            dimension_semantics=("parallel", "parallel"),
            vmem_limit_bytes=vmem_limit),
    )(wf, pf)


def _lif_kernel(y_ref, sc_ref, sh_ref, out_ref):
    """Whole-T LIF dynamics for one pixel chunk.  y stacks branch-1 conv outputs
    (all ops) then branch-2 conv outputs on sublanes ([R, tile], branch-major);
    the folded-BN affine is applied, the two branch halves are summed (tile-aligned
    half add when half%8==0, else one XLU roll), then the leaky-integrate-fire
    recurrence (decay_input=False, hard reset to 0, heaviside at v >= V_TH) runs
    with the membrane potential carried in registers."""
    T, R, tile = y_ref.shape
    half = R // 2
    rows_out = out_ref.shape[1]
    decay = 1.0 - 1.0 / TAU
    sc_b = jnp.broadcast_to(sc_ref[...], (R, tile))   # hoisted out of the T loop
    sh_b = jnp.broadcast_to(sh_ref[...], (R, tile))
    v = jnp.zeros((rows_out, tile), jnp.float32)
    # TODO(synk): switch to lax.fori_loop with v as carry if T grows beyond ~8.
    for t in range(T):                                # T small and static -> unrolled
        z_all = y_ref[t].astype(jnp.float32) * sc_b + sh_b   # folded BN, both branches
        if rows_out == half:
            z = z_all[:half] + z_all[half:]           # 8-sublane-aligned halves
        else:
            # half not 8-aligned: roll by half duplicates the branch sum in both halves
            z = z_all + pltpu.roll(z_all, half, axis=0)
        v = v * decay + z
        spike = (v >= V_TH).astype(jnp.float32)
        out_ref[t] = spike
        v = v * (1.0 - spike)                         # hard reset (v_reset = 0)


def lif_fire(y, sc, sh):
    """y: [T, R, NHW] bf16 conv outputs (branch-major rows), sc/sh: [R, 1] folded-BN
    scale/shift.  Returns spikes [T, rows_out, NHW] f32; the first n_ops*Cout rows
    hold the per-op spike trains (rows_out may be R when R/2 is not 8-aligned)."""
    T, R, nhw = y.shape
    half = R // 2
    rows_out = half if half % 8 == 0 else R

    def working_set(t):                      # bytes, double-buffered blocks
        return 4 * T * R * t + 8 * T * rows_out * t + 16 * R

    tile = _pick_tile(nhw, _LIF_TILE_CAP)
    while tile > 128 and working_set(tile) > _VMEM_BUDGET:
        tile = _pick_tile(nhw, tile - 128)
    n_m = nhw // tile
    vmem_limit = int(min(max(2 * working_set(tile), 32 * 2**20), 48 * 2**20))

    return pl.pallas_call(
        _lif_kernel,
        out_shape=jax.ShapeDtypeStruct((T, rows_out, nhw), jnp.float32),
        grid_spec=pltpu.PrefetchScalarGridSpec(
            num_scalar_prefetch=0,
            grid=(n_m,),
            in_specs=[
                pl.BlockSpec((T, R, tile), lambda m: (0, 0, m)),
                pl.BlockSpec((R, 1), lambda m: (0, 0)),
                pl.BlockSpec((R, 1), lambda m: (0, 0)),
            ],
            out_specs=pl.BlockSpec((T, rows_out, tile), lambda m: (0, 0, m))),
        compiler_params=pltpu.CompilerParams(
            dimension_semantics=("parallel",),
            vmem_limit_bytes=vmem_limit),
    )(y, sc, sh)


# ------------------------------------------------------------------------------ glue
def patches_3x3(x):
    """x: [T, C, N, H, W] (channel-major) -> [T, 9*C, N*H*W] patches for a
    3x3 / stride 1 / pad 1 conv, K ordered (tap, cin) to match the packed weights."""
    T, C, N, H, W = x.shape
    xp = jnp.pad(x, ((0, 0), (0, 0), (0, 0), (1, 1), (1, 1)))
    taps = [xp[:, :, :, dy:dy + H, dx:dx + W] for dy in range(3) for dx in range(3)]
    return jnp.stack(taps, axis=1).reshape(T, 9 * C, N * H * W)


def fused_weight(w1_list, w2_list):
    """Branch-major block-diagonal weight for n_ops ops sharing the same (x1, x2):
       rows [0 : n_ops*Cout)             = branch-1 (conv1) weights, op-major,
       rows [n_ops*Cout : 2*n_ops*Cout)  = branch-2 (conv2) weights, op-major.
    Columns are [9*C1 | 9*C2] (x1 patches then x2 patches)."""
    cout = w1_list[0].shape[-1]
    k1, k2 = 9 * w1_list[0].shape[2], 9 * w2_list[0].shape[2]
    b1 = jnp.concatenate(
        [jnp.transpose(w, (3, 0, 1, 2)).reshape(cout, k1) for w in w1_list], axis=0)
    b2 = jnp.concatenate(
        [jnp.transpose(w, (3, 0, 1, 2)).reshape(cout, k2) for w in w2_list], axis=0)
    top = jnp.concatenate([b1, jnp.zeros((b1.shape[0], k2), b1.dtype)], axis=1)
    bot = jnp.concatenate([jnp.zeros((b2.shape[0], k1), b2.dtype), b2], axis=1)
    return jnp.concatenate([top, bot], axis=0)


def _pad_axis(x, axis, mult):
    pad = (-x.shape[axis]) % mult
    if pad == 0:
        return x
    widths = [(0, 0)] * x.ndim
    widths[axis] = (0, pad)
    return jnp.pad(x, widths)


def fold_bn(ssum, ssq, gamma, beta, count):
    """Training-mode BatchNorm2d (biased variance over the merged T*N*H*W batch),
    folded to per-channel scale/shift, from the conv kernel's partial statistics."""
    s = jnp.sum(ssum, axis=(0, 1, 3))
    q = jnp.sum(ssq, axis=(0, 1, 3))
    mean = s / count
    var = jnp.maximum(q / count - mean * mean, 0.0)
    sc = gamma * jax.lax.rsqrt(var + BN_EPS)
    sh = beta - mean * sc
    return sc[:, None], sh[:, None]


def search_conv_ops(x1, x2, ops):
    """Runs n_ops SearchSpikingConv2d_cell ops (is_DGS=False) that all consume the
    same (x1, x2) pair:  spike_m(bn1_m(conv1_m(x1)) + bn2_m(conv2_m(x2))) per op.
    x1, x2: [T, C, N, H, W] channel-major.  Returns a list of [T, Cout, N*H*W] spikes.
    Conv biases are omitted: training-mode BN's mean subtraction cancels them exactly."""
    assert all(o["w1"].shape == ops[0]["w1"].shape for o in ops)
    assert all(o["w2"].shape == ops[0]["w2"].shape for o in ops)
    T = x1.shape[0]
    N, H, W = x1.shape[2:]
    nhw = N * H * W
    cout = ops[0]["w1"].shape[-1]
    n_ops = len(ops)

    pf = jnp.concatenate([patches_3x3(x1), patches_3x3(x2)], axis=1)  # shared im2col
    wf = fused_weight([o["w1"] for o in ops], [o["w2"] for o in ops])
    pf = _pad_axis(pf, 1, 16).astype(jnp.bfloat16)   # bf16 MXU operands,
    wf = _pad_axis(wf, 1, 16).astype(jnp.bfloat16)   # K padded for sublane packing

    y, ssum, ssq = conv_bn_stats(wf, pf)
    gamma = jnp.concatenate([o["g1"] for o in ops] + [o["g2"] for o in ops])
    beta = jnp.concatenate([o["be1"] for o in ops] + [o["be2"] for o in ops])
    sc, sh = fold_bn(ssum, ssq, gamma, beta, T * nhw)
    # TODO(synk): save_v_LIFNode.v_before_spike internal buffer is not materialized
    # (it is not part of the forward output).
    spikes = lif_fire(y, sc, sh)                      # per-op sums in the first rows
    return [spikes[:, o * cout:(o + 1) * cout, :] for o in range(n_ops)]


def cell_forward(prev_prev_input, prev_input, params):
    """Cell.forward with downup_sample == 0 and matching spatial sizes.
    Inputs: [T, N, C, H, W]; returns (prev_input, concat_feature [T, N, 3*Cout, H, W])."""
    # TODO(synk): nearest-interpolation resampling branch (downup_sample != 0 or
    # mismatched spatial sizes) is not exercised for this configuration.
    T, N, _, H, W = prev_prev_input.shape
    s0 = jnp.transpose(prev_prev_input, (0, 2, 1, 3, 4))     # [T, C, N, H, W]
    s1 = jnp.transpose(prev_input, (0, 2, 1, 3, 4))

    # _ops[0] and _ops[1] consume the identical (s0, s1) -> one fused sweep.
    spk0, spk1 = search_conv_ops(s0, s1, [params["op0"], params["op1"]])
    cout = spk0.shape[1]
    spk0_c = spk0.reshape(T, cout, N, H, W)
    spk1_c = spk1.reshape(T, cout, N, H, W)
    (spk2,) = search_conv_ops(spk0_c, spk1_c, [params["op2"]])   # _ops[2](spk0, spk1)

    feats = [jnp.transpose(s.reshape(T, cout, N, H, W), (0, 2, 1, 3, 4))
             for s in (spk0, spk1, spk2)]
    concat = jnp.concatenate(feats, axis=2)                  # [T, N, 3*Cout, H, W]
    return prev_input, concat


def init_op_params(key, c_in1, c_in2, c_out):
    ks = jax.random.split(key, 6)

    def conv_w(k, cin):
        bound = 1.0 / jnp.sqrt(float(cin * 9))
        return jax.random.uniform(k, (3, 3, cin, c_out), jnp.float32, -bound, bound)

    # NOTE: conv biases are not created -- training-mode BN cancels them exactly.
    return dict(
        w1=conv_w(ks[0], c_in1), w2=conv_w(ks[1], c_in2),
        g1=1.0 + 0.1 * jax.random.normal(ks[2], (c_out,), jnp.float32),
        be1=0.1 * jax.random.normal(ks[3], (c_out,), jnp.float32),
        g2=1.0 + 0.1 * jax.random.normal(ks[4], (c_out,), jnp.float32),
        be2=0.1 * jax.random.normal(ks[5], (c_out,), jnp.float32),
    )


if __name__ == "__main__":
    key = jax.random.PRNGKey(0)
    T, N, H, W = 4, 2, 16, 16
    block_multiplier = 3
    filter_multiplier = 4
    C_out = filter_multiplier                                   # 4
    C_prev = block_multiplier * filter_multiplier               # 12
    C_prev_prev = block_multiplier * filter_multiplier          # 12
    NHW = N * H * W

    kx0, kx1, k0, k1, k2 = jax.random.split(key, 5)
    prev_prev_input = jax.random.normal(kx0, (T, N, C_prev_prev, H, W), jnp.float32)
    prev_input = jax.random.normal(kx1, (T, N, C_prev, H, W), jnp.float32)

    # cell_arch => op0/op1 convs take (C_prev_prev, C_prev), op2 takes (C_out, C_out).
    params = dict(
        op0=init_op_params(k0, C_prev_prev, C_prev, C_out),
        op1=init_op_params(k1, C_prev_prev, C_prev, C_out),
        op2=init_op_params(k2, C_out, C_out, C_out),
    )

    prev_out, concat_feature = jax.jit(cell_forward)(prev_prev_input, prev_input, params)
    jax.block_until_ready(concat_feature)

    # --- sanity checks on the fused op0+op1 path (kernels re-run eagerly) -------------
    s0 = jnp.transpose(prev_prev_input, (0, 2, 1, 3, 4))
    s1 = jnp.transpose(prev_input, (0, 2, 1, 3, 4))
    ops01 = [params["op0"], params["op1"]]
    pf = _pad_axis(jnp.concatenate([patches_3x3(s0), patches_3x3(s1)], axis=1),
                   1, 16).astype(jnp.bfloat16)
    wf = _pad_axis(fused_weight([o["w1"] for o in ops01], [o["w2"] for o in ops01]),
                   1, 16).astype(jnp.bfloat16)
    y, ssum, ssq = conv_bn_stats(wf, pf)
    yf = y.astype(jnp.float32)

    # (a) fused block-diagonal conv matches XLA convs (tolerance covers bf16 rounding
    #     of operands and of the stored conv output)
    def nchw(rows):
        return jnp.transpose(rows.reshape(T, C_out, N, H, W),
                             (0, 2, 1, 3, 4)).reshape(T * N, C_out, H, W)

    ref_b1_op0 = jax.lax.conv_general_dilated(
        prev_prev_input.reshape(T * N, C_prev_prev, H, W), params["op0"]["w1"],
        window_strides=(1, 1), padding=((1, 1), (1, 1)),
        dimension_numbers=("NCHW", "HWIO", "NCHW"))
    ref_b2_op1 = jax.lax.conv_general_dilated(
        prev_input.reshape(T * N, C_prev, H, W), params["op1"]["w2"],
        window_strides=(1, 1), padding=((1, 1), (1, 1)),
        dimension_numbers=("NCHW", "HWIO", "NCHW"))
    assert bool(jnp.allclose(nchw(yf[:, 0:C_out]), ref_b1_op0, atol=1e-1, rtol=1e-1))
    assert bool(jnp.allclose(nchw(yf[:, 3 * C_out:4 * C_out]), ref_b2_op1,
                             atol=1e-1, rtol=1e-1))

    # (b) in-kernel BN statistics match a direct mean/var fold on the stored y
    gamma = jnp.concatenate([params["op0"]["g1"], params["op1"]["g1"],
                             params["op0"]["g2"], params["op1"]["g2"]])
    beta = jnp.concatenate([params["op0"]["be1"], params["op1"]["be1"],
                            params["op0"]["be2"], params["op1"]["be2"]])
    sc, sh = fold_bn(ssum, ssq, gamma, beta, T * NHW)
    mean_ref = jnp.mean(yf, axis=(0, 2))
    var_ref = jnp.mean(jnp.square(yf - mean_ref[None, :, None]), axis=(0, 2))
    sc_ref = gamma / jnp.sqrt(var_ref + BN_EPS)
    sh_ref = beta - mean_ref * sc_ref
    assert bool(jnp.allclose(sc[:, 0], sc_ref, atol=1e-3, rtol=1e-3))
    assert bool(jnp.allclose(sh[:, 0], sh_ref, atol=1e-3, rtol=1e-3))

    # (c) Pallas LIF (aligned-half path, half=8) matches a pure-JAX scan
    spikes_pallas = lif_fire(y, sc, sh)
    z2 = yf * sc[None] + sh[None]
    half = 2 * C_out
    z = z2[:, :half] + z2[:, half:]

    def _step(v, zt):
        v = v * (1.0 - 1.0 / TAU) + zt
        s = (v >= V_TH).astype(jnp.float32)
        return v * (1.0 - s), s

    _, spikes_ref = jax.lax.scan(_step, jnp.zeros_like(z[0]), z)
    assert float(jnp.mean((spikes_pallas != spikes_ref).astype(jnp.float32))) < 1e-3

    # (d) Pallas LIF roll path (single op, half=4) matches a pure-JAX scan
    kr1, kr2, kr3 = jax.random.split(jax.random.PRNGKey(1), 3)
    y_small = jax.random.normal(kr1, (T, 2 * C_out, NHW), jnp.float32).astype(jnp.bfloat16)
    sc_s = (1.0 + 0.1 * jax.random.normal(kr2, (2 * C_out,), jnp.float32))[:, None]
    sh_s = (0.1 * jax.random.normal(kr3, (2 * C_out,), jnp.float32))[:, None]
    spikes_small = lif_fire(y_small, sc_s, sh_s)
    zs = y_small.astype(jnp.float32) * sc_s[None] + sh_s[None]
    zsum = zs[:, :C_out] + zs[:, C_out:]
    _, spikes_small_ref = jax.lax.scan(_step, jnp.zeros_like(zsum[0]), zsum)
    assert float(jnp.mean(
        (spikes_small[:, :C_out] != spikes_small_ref).astype(jnp.float32))) < 1e-3

    # --- output invariants ------------------------------------------------------------
    assert prev_out.shape == (T, N, C_prev, H, W)
    assert concat_feature.shape == (T, N, block_multiplier * C_out, H, W)
    assert concat_feature.dtype == jnp.float32
    assert bool(jnp.all((concat_feature == 0.0) | (concat_feature == 1.0)))  # binary spikes
    print("KERNEL_OK")
</pallas_src>

<mosaic_0001>
module attributes {stable_mosaic.version = 11 : i64} {
  func.func @_conv_bn_kernel(%arg0: i32, %arg1: i32, %arg2: memref<16x224xbf16, #tpu.memory_space<vmem>>, %arg3: memref<1x224x512xbf16, #tpu.memory_space<vmem>>, %arg4: memref<1x16x512xbf16, #tpu.memory_space<vmem>>, %arg5: memref<1x1x16x128xf32, #tpu.memory_space<vmem>>, %arg6: memref<1x1x16x128xf32, #tpu.memory_space<vmem>>) attributes {dimension_semantics = [#tpu.dimension_semantics<parallel>, #tpu.dimension_semantics<parallel>], iteration_bounds = array<i64: 4, 1>, scalar_prefetch = 0 : i64, scratch_operands = 0 : i64, tpu.core_type = #tpu.core_type<tc>, window_params = [{pipeline_mode = #tpu.pipeline_mode<synchronous>, transform_indices = @transform_0, window_bounds = array<i64: 16, 224>}, {transform_indices = @transform_1, window_bounds = array<i64: 1, 224, 512>}, {transform_indices = @transform_2, window_bounds = array<i64: 1, 16, 512>}, {transform_indices = @transform_3, window_bounds = array<i64: 1, 1, 16, 128>}, {transform_indices = @transform_4, window_bounds = array<i64: 1, 1, 16, 128>}]} {
    %c0 = arith.constant 0 : index
    %c0_0 = arith.constant 0 : index
    %0 = vector.load %arg2[%c0, %c0_0] : memref<16x224xbf16, #tpu.memory_space<vmem>>, vector<16x224xbf16>
    %c0_1 = arith.constant 0 : index
    %c0_2 = arith.constant 0 : index
    %c0_3 = arith.constant 0 : index
    %1 = vector.load %arg3[%c0_1, %c0_2, %c0_3] : memref<1x224x512xbf16, #tpu.memory_space<vmem>>, vector<1x224x512xbf16>
    %2 = vector.shape_cast %1 : vector<1x224x512xbf16> to vector<224x512xbf16>
    %cst = arith.constant dense<0.000000e+00> : vector<16x512xf32>
    %3 = tpu.matmul %0, %2, %cst {dimension_numbers = #tpu.dot_dimension_numbers<[1], [0], [0], [1], [0, 0, 1, 1], [], []>} : vector<16x224xbf16>, vector<224x512xbf16>, vector<16x512xf32> -> vector<16x512xf32>
    %4 = arith.truncf %3 : vector<16x512xf32> to vector<16x512xbf16>
    %c0_4 = arith.constant 0 : index
    %c0_5 = arith.constant 0 : index
    %c0_6 = arith.constant 0 : index
    %5 = vector.load %arg4[%c0_4, %c0_5, %c0_6] : memref<1x16x512xbf16, #tpu.memory_space<vmem>>, vector<1x16x512xbf16>
    %6 = vector.shape_cast %5 : vector<1x16x512xbf16> to vector<16x512xbf16>
    %7 = vector.shape_cast %4 : vector<16x512xbf16> to vector<1x16x512xbf16>
    tpu.vector_store %arg4[%c0_4, %c0_5, %c0_6], %7 {strides = array<i32>} : memref<1x16x512xbf16, #tpu.memory_space<vmem>>, vector<1x16x512xbf16>,
    %8 = arith.extf %4 : vector<16x512xbf16> to vector<16x512xf32>
    %9 = vector.extract_strided_slice %8 {offsets = [0, 0], sizes = [16, 128], strides = [1, 1]} : vector<16x512xf32> to vector<16x128xf32>
    %10 = vector.extract_strided_slice %8 {offsets = [0, 128], sizes = [16, 128], strides = [1, 1]} : vector<16x512xf32> to vector<16x128xf32>
    %11 = vector.extract_strided_slice %8 {offsets = [0, 256], sizes = [16, 128], strides = [1, 1]} : vector<16x512xf32> to vector<16x128xf32>
    %12 = vector.extract_strided_slice %8 {offsets = [0, 384], sizes = [16, 128], strides = [1, 1]} : vector<16x512xf32> to vector<16x128xf32>
    %13 = arith.mulf %9, %9 : vector<16x128xf32>
    %14 = arith.mulf %10, %10 : vector<16x128xf32>
    %15 = arith.mulf %11, %11 : vector<16x128xf32>
    %16 = arith.mulf %12, %12 : vector<16x128xf32>
    %17 = arith.addf %9, %10 : vector<16x128xf32>
    %18 = arith.addf %11, %12 : vector<16x128xf32>
    %19 = arith.addf %17, %18 : vector<16x128xf32>
    %c0_7 = arith.constant 0 : index
    %c0_8 = arith.constant 0 : index
    %c0_9 = arith.constant 0 : index
    %c0_10 = arith.constant 0 : index
    %20 = vector.load %arg5[%c0_7, %c0_8, %c0_9, %c0_10] : memref<1x1x16x128xf32, #tpu.memory_space<vmem>>, vector<1x1x16x128xf32>
    %21 = vector.shape_cast %20 : vector<1x1x16x128xf32> to vector<16x128xf32>
    %22 = vector.shape_cast %19 : vector<16x128xf32> to vector<1x1x16x128xf32>
    tpu.vector_store %arg5[%c0_7, %c0_8, %c0_9, %c0_10], %22 {strides = array<i32>} : memref<1x1x16x128xf32, #tpu.memory_space<vmem>>, vector<1x1x16x128xf32>,
    %23 = arith.addf %13, %14 : vector<16x128xf32>
    %24 = arith.addf %15, %16 : vector<16x128xf32>
    %25 = arith.addf %23, %24 : vector<16x128xf32>
    %c0_11 = arith.constant 0 : index
    %c0_12 = arith.constant 0 : index
    %c0_13 = arith.constant 0 : index
    %c0_14 = arith.constant 0 : index
    %26 = vector.load %arg6[%c0_11, %c0_12, %c0_13, %c0_14] : memref<1x1x16x128xf32, #tpu.memory_space<vmem>>, vector<1x1x16x128xf32>
    %27 = vector.shape_cast %26 : vector<1x1x16x128xf32> to vector<16x128xf32>
    %28 = vector.shape_cast %25 : vector<16x128xf32> to vector<1x1x16x128xf32>
    tpu.vector_store %arg6[%c0_11, %c0_12, %c0_13, %c0_14], %28 {strides = array<i32>} : memref<1x1x16x128xf32, #tpu.memory_space<vmem>>, vector<1x1x16x128xf32>,
    return
  }
  func.func @transform_0(%arg0: i32, %arg1: i32) -> (i32, i32) {
    %c0_i32 = arith.constant 0 : i32
    %c0_i32_0 = arith.constant 0 : i32
    %c0_i32_1 = arith.constant 0 : i32
    return %c0_i32, %c0_i32_0 : i32, i32
  }
  func.func @transform_1(%arg0: i32, %arg1: i32) -> (i32, i32, i32) {
    %c0_i32 = arith.constant 0 : i32
    %c0_i32_0 = arith.constant 0 : i32
    return %arg0, %c0_i32, %arg1 : i32, i32, i32
  }
  func.func @transform_2(%arg0: i32, %arg1: i32) -> (i32, i32, i32) {
    %c0_i32 = arith.constant 0 : i32
    %c0_i32_0 = arith.constant 0 : i32
    return %arg0, %c0_i32, %arg1 : i32, i32, i32
  }
  func.func @transform_3(%arg0: i32, %arg1: i32) -> (i32, i32, i32, i32) {
    %c0_i32 = arith.constant 0 : i32
    %c0_i32_0 = arith.constant 0 : i32
    %c0_i32_1 = arith.constant 0 : i32
    return %arg0, %arg1, %c0_i32, %c0_i32_0 : i32, i32, i32, i32
  }
  func.func @transform_4(%arg0: i32, %arg1: i32) -> (i32, i32, i32, i32) {
    %c0_i32 = arith.constant 0 : i32
    %c0_i32_0 = arith.constant 0 : i32
    %c0_i32_1 = arith.constant 0 : i32
    return %arg0, %arg1, %c0_i32, %c0_i32_0 : i32, i32, i32, i32
  }
}

module attributes {stable_mosaic.version = 11 : i64} {
  func.func @_lif_kernel(%arg0: i32, %arg1: memref<4x16x512xbf16, #tpu.memory_space<vmem>>, %arg2: memref<16x1xf32, #tpu.memory_space<vmem>>, %arg3: memref<16x1xf32, #tpu.memory_space<vmem>>, %arg4: memref<4x8x512xf32, #tpu.memory_space<vmem>>) attributes {dimension_semantics = [#tpu.dimension_semantics<parallel>], iteration_bounds = array<i64: 1>, scalar_prefetch = 0 : i64, scratch_operands = 0 : i64, tpu.core_type = #tpu.core_type<tc>, window_params = [{transform_indices = @transform_0, window_bounds = array<i64: 4, 16, 512>}, {pipeline_mode = #tpu.pipeline_mode<synchronous>, transform_indices = @transform_1, window_bounds = array<i64: 16, 1>}, {pipeline_mode = #tpu.pipeline_mode<synchronous>, transform_indices = @transform_2, window_bounds = array<i64: 16, 1>}, {transform_indices = @transform_3, window_bounds = array<i64: 4, 8, 512>}]} {
    %c0 = arith.constant 0 : index
    %c0_0 = arith.constant 0 : index
    %0 = vector.load %arg2[%c0, %c0_0] : memref<16x1xf32, #tpu.memory_space<vmem>>, vector<16x1xf32>
    %1 = vector.shape_cast %0 : vector<16x1xf32> to vector<16x1xf32>
    %2 = vector.broadcast %1 : vector<16x1xf32> to vector<16x512xf32>
    %c0_1 = arith.constant 0 : index
    %c0_2 = arith.constant 0 : index
    %3 = vector.load %arg3[%c0_1, %c0_2] : memref<16x1xf32, #tpu.memory_space<vmem>>, vector<16x1xf32>
    %4 = vector.shape_cast %3 : vector<16x1xf32> to vector<16x1xf32>
    %5 = vector.broadcast %4 : vector<16x1xf32> to vector<16x512xf32>
    %cst = arith.constant 0.000000e+00 : f32
    %6 = vector.broadcast %cst : f32 to vector<8x512xf32>
    %c0_3 = arith.constant 0 : index
    %c0_4 = arith.constant 0 : index
    %c0_5 = arith.constant 0 : index
    %7 = vector.load %arg1[%c0_3, %c0_4, %c0_5] : memref<4x16x512xbf16, #tpu.memory_space<vmem>>, vector<1x16x512xbf16>
    %8 = vector.shape_cast %7 : vector<1x16x512xbf16> to vector<16x512xbf16>
    %9 = arith.extf %8 : vector<16x512xbf16> to vector<16x512xf32>
    %10 = arith.mulf %9, %2 : vector<16x512xf32>
    %11 = arith.addf %10, %5 : vector<16x512xf32>
    %12 = vector.extract_strided_slice %11 {offsets = [0, 0], sizes = [8, 512], strides = [1, 1]} : vector<16x512xf32> to vector<8x512xf32>
    %13 = vector.extract_strided_slice %11 {offsets = [8, 0], sizes = [8, 512], strides = [1, 1]} : vector<16x512xf32> to vector<8x512xf32>
    %14 = arith.addf %12, %13 : vector<8x512xf32>
    %cst_6 = arith.constant 2.000000e-01 : f32
    %15 = vector.broadcast %cst_6 : f32 to vector<8x512xf32>
    %16 = arith.mulf %6, %15 : vector<8x512xf32>
    %17 = arith.addf %16, %14 : vector<8x512xf32>
    %cst_7 = arith.constant 5.000000e-01 : f32
    %18 = vector.broadcast %cst_7 : f32 to vector<8x512xf32>
    %19 = arith.cmpf oge, %17, %18 : vector<8x512xf32>
    %20 = arith.extui %19 : vector<8x512xi1> to vector<8x512xi32>
    %21 = arith.sitofp %20 : vector<8x512xi32> to vector<8x512xf32>
    %c0_8 = arith.constant 0 : index
    %c0_9 = arith.constant 0 : index
    %c0_10 = arith.constant 0 : index
    %22 = vector.load %arg4[%c0_8, %c0_9, %c0_10] : memref<4x8x512xf32, #tpu.memory_space<vmem>>, vector<1x8x512xf32>
    %23 = vector.shape_cast %22 : vector<1x8x512xf32> to vector<8x512xf32>
    %24 = vector.shape_cast %21 : vector<8x512xf32> to vector<1x8x512xf32>
    tpu.vector_store %arg4[%c0_8, %c0_9, %c0_10], %24 {strides = array<i32>} : memref<4x8x512xf32, #tpu.memory_space<vmem>>, vector<1x8x512xf32>,
    %cst_11 = arith.constant 1.000000e+00 : f32
    %25 = vector.broadcast %cst_11 : f32 to vector<8x512xf32>
    %26 = arith.subf %25, %21 : vector<8x512xf32>
    %27 = arith.mulf %17, %26 : vector<8x512xf32>
    %c1 = arith.constant 1 : index
    %c0_12 = arith.constant 0 : index
    %c0_13 = arith.constant 0 : index
    %28 = vector.load %arg1[%c1, %c0_12, %c0_13] : memref<4x16x512xbf16, #tpu.memory_space<vmem>>, vector<1x16x512xbf16>
    %29 = vector.shape_cast %28 : vector<1x16x512xbf16> to vector<16x512xbf16>
    %30 = arith.extf %29 : vector<16x512xbf16> to vector<16x512xf32>
    %31 = arith.mulf %30, %2 : vector<16x512xf32>
    %32 = arith.addf %31, %5 : vector<16x512xf32>
    %33 = vector.extract_strided_slice %32 {offsets = [0, 0], sizes = [8, 512], strides = [1, 1]} : vector<16x512xf32> to vector<8x512xf32>
    %34 = vector.extract_strided_slice %32 {offsets = [8, 0], sizes = [8, 512], strides = [1, 1]} : vector<16x512xf32> to vector<8x512xf32>
    %35 = arith.addf %33, %34 : vector<8x512xf32>
    %cst_14 = arith.constant 2.000000e-01 : f32
    %36 = vector.broadcast %cst_14 : f32 to vector<8x512xf32>
    %37 = arith.mulf %27, %36 : vector<8x512xf32>
    %38 = arith.addf %37, %35 : vector<8x512xf32>
    %cst_15 = arith.constant 5.000000e-01 : f32
    %39 = vector.broadcast %cst_15 : f32 to vector<8x512xf32>
    %40 = arith.cmpf oge, %38, %39 : vector<8x512xf32>
    %41 = arith.extui %40 : vector<8x512xi1> to vector<8x512xi32>
    %42 = arith.sitofp %41 : vector<8x512xi32> to vector<8x512xf32>
    %c1_16 = arith.constant 1 : index
    %c0_17 = arith.constant 0 : index
    %c0_18 = arith.constant 0 : index
    %43 = vector.load %arg4[%c1_16, %c0_17, %c0_18] : memref<4x8x512xf32, #tpu.memory_space<vmem>>, vector<1x8x512xf32>
    %44 = vector.shape_cast %43 : vector<1x8x512xf32> to vector<8x512xf32>
    %45 = vector.shape_cast %42 : vector<8x512xf32> to vector<1x8x512xf32>
    tpu.vector_store %arg4[%c1_16, %c0_17, %c0_18], %45 {strides = array<i32>} : memref<4x8x512xf32, #tpu.memory_space<vmem>>, vector<1x8x512xf32>,
    %cst_19 = arith.constant 1.000000e+00 : f32
    %46 = vector.broadcast %cst_19 : f32 to vector<8x512xf32>
    %47 = arith.subf %46, %42 : vector<8x512xf32>
    %48 = arith.mulf %38, %47 : vector<8x512xf32>
    %c2 = arith.constant 2 : index
    %c0_20 = arith.constant 0 : index
    %c0_21 = arith.constant 0 : index
    %49 = vector.load %arg1[%c2, %c0_20, %c0_21] : memref<4x16x512xbf16, #tpu.memory_space<vmem>>, vector<1x16x512xbf16>
    %50 = vector.shape_cast %49 : vector<1x16x512xbf16> to vector<16x512xbf16>
    %51 = arith.extf %50 : vector<16x512xbf16> to vector<16x512xf32>
    %52 = arith.mulf %51, %2 : vector<16x512xf32>
    %53 = arith.addf %52, %5 : vector<16x512xf32>
    %54 = vector.extract_strided_slice %53 {offsets = [0, 0], sizes = [8, 512], strides = [1, 1]} : vector<16x512xf32> to vector<8x512xf32>
    %55 = vector.extract_strided_slice %53 {offsets = [8, 0], sizes = [8, 512], strides = [1, 1]} : vector<16x512xf32> to vector<8x512xf32>
    %56 = arith.addf %54, %55 : vector<8x512xf32>
    %cst_22 = arith.constant 2.000000e-01 : f32
    %57 = vector.broadcast %cst_22 : f32 to vector<8x512xf32>
    %58 = arith.mulf %48, %57 : vector<8x512xf32>
    %59 = arith.addf %58, %56 : vector<8x512xf32>
    %cst_23 = arith.constant 5.000000e-01 : f32
    %60 = vector.broadcast %cst_23 : f32 to vector<8x512xf32>
    %61 = arith.cmpf oge, %59, %60 : vector<8x512xf32>
    %62 = arith.extui %61 : vector<8x512xi1> to vector<8x512xi32>
    %63 = arith.sitofp %62 : vector<8x512xi32> to vector<8x512xf32>
    %c2_24 = arith.constant 2 : index
    %c0_25 = arith.constant 0 : index
    %c0_26 = arith.constant 0 : index
    %64 = vector.load %arg4[%c2_24, %c0_25, %c0_26] : memref<4x8x512xf32, #tpu.memory_space<vmem>>, vector<1x8x512xf32>
    %65 = vector.shape_cast %64 : vector<1x8x512xf32> to vector<8x512xf32>
    %66 = vector.shape_cast %63 : vector<8x512xf32> to vector<1x8x512xf32>
    tpu.vector_store %arg4[%c2_24, %c0_25, %c0_26], %66 {strides = array<i32>} : memref<4x8x512xf32, #tpu.memory_space<vmem>>, vector<1x8x512xf32>,
    %cst_27 = arith.constant 1.000000e+00 : f32
    %67 = vector.broadcast %cst_27 : f32 to vector<8x512xf32>
    %68 = arith.subf %67, %63 : vector<8x512xf32>
    %69 = arith.mulf %59, %68 : vector<8x512xf32>
    %c3 = arith.constant 3 : index
    %c0_28 = arith.constant 0 : index
    %c0_29 = arith.constant 0 : index
    %70 = vector.load %arg1[%c3, %c0_28, %c0_29] : memref<4x16x512xbf16, #tpu.memory_space<vmem>>, vector<1x16x512xbf16>
    %71 = vector.shape_cast %70 : vector<1x16x512xbf16> to vector<16x512xbf16>
    %72 = arith.extf %71 : vector<16x512xbf16> to vector<16x512xf32>
    %73 = arith.mulf %72, %2 : vector<16x512xf32>
    %74 = arith.addf %73, %5 : vector<16x512xf32>
    %75 = vector.extract_strided_slice %74 {offsets = [0, 0], sizes = [8, 512], strides = [1, 1]} : vector<16x512xf32> to vector<8x512xf32>
    %76 = vector.extract_strided_slice %74 {offsets = [8, 0], sizes = [8, 512], strides = [1, 1]} : vector<16x512xf32> to vector<8x512xf32>
    %77 = arith.addf %75, %76 : vector<8x512xf32>
    %cst_30 = arith.constant 2.000000e-01 : f32
    %78 = vector.broadcast %cst_30 : f32 to vector<8x512xf32>
    %79 = arith.mulf %69, %78 : vector<8x512xf32>
    %80 = arith.addf %79, %77 : vector<8x512xf32>
    %cst_31 = arith.constant 5.000000e-01 : f32
    %81 = vector.broadcast %cst_31 : f32 to vector<8x512xf32>
    %82 = arith.cmpf oge, %80, %81 : vector<8x512xf32>
    %83 = arith.extui %82 : vector<8x512xi1> to vector<8x512xi32>
    %84 = arith.sitofp %83 : vector<8x512xi32> to vector<8x512xf32>
    %c3_32 = arith.constant 3 : index
    %c0_33 = arith.constant 0 : index
    %c0_34 = arith.constant 0 : index
    %85 = vector.load %arg4[%c3_32, %c0_33, %c0_34] : memref<4x8x512xf32, #tpu.memory_space<vmem>>, vector<1x8x512xf32>
    %86 = vector.shape_cast %85 : vector<1x8x512xf32> to vector<8x512xf32>
    %87 = vector.shape_cast %84 : vector<8x512xf32> to vector<1x8x512xf32>
    tpu.vector_store %arg4[%c3_32, %c0_33, %c0_34], %87 {strides = array<i32>} : memref<4x8x512xf32, #tpu.memory_space<vmem>>, vector<1x8x512xf32>,
    return
  }
  func.func @transform_0(%arg0: i32) -> (i32, i32, i32) {
    %c0_i32 = arith.constant 0 : i32
    %c0_i32_0 = arith.constant 0 : i32
    %c0_i32_1 = arith.constant 0 : i32
    return %c0_i32, %c0_i32_0, %arg0 : i32, i32, i32
  }
  func.func @transform_1(%arg0: i32) -> (i32, i32) {
    %c0_i32 = arith.constant 0 : i32
    %c0_i32_0 = arith.constant 0 : i32
    %c0_i32_1 = arith.constant 0 : i32
    return %c0_i32, %c0_i32_0 : i32, i32
  }
  func.func @transform_2(%arg0: i32) -> (i32, i32) {
    %c0_i32 = arith.constant 0 : i32
    %c0_i32_0 = arith.constant 0 : i32
    %c0_i32_1 = arith.constant 0 : i32
    return %c0_i32, %c0_i32_0 : i32, i32
  }
  func.func @transform_3(%arg0: i32) -> (i32, i32, i32) {
    %c0_i32 = arith.constant 0 : i32
    %c0_i32_0 = arith.constant 0 : i32
    %c0_i32_1 = arith.constant 0 : i32
    return %c0_i32, %c0_i32_0, %arg0 : i32, i32, i32
  }
}

module attributes {stable_mosaic.version = 11 : i64} {
  func.func @_lif_kernel(%arg0: i32, %arg1: memref<4x8x512xbf16, #tpu.memory_space<vmem>>, %arg2: memref<8x1xf32, #tpu.memory_space<vmem>>, %arg3: memref<8x1xf32, #tpu.memory_space<vmem>>, %arg4: memref<4x8x512xf32, #tpu.memory_space<vmem>>) attributes {dimension_semantics = [#tpu.dimension_semantics<parallel>], iteration_bounds = array<i64: 1>, scalar_prefetch = 0 : i64, scratch_operands = 0 : i64, tpu.core_type = #tpu.core_type<tc>, window_params = [{transform_indices = @transform_0, window_bounds = array<i64: 4, 8, 512>}, {pipeline_mode = #tpu.pipeline_mode<synchronous>, transform_indices = @transform_1, window_bounds = array<i64: 8, 1>}, {pipeline_mode = #tpu.pipeline_mode<synchronous>, transform_indices = @transform_2, window_bounds = array<i64: 8, 1>}, {transform_indices = @transform_3, window_bounds = array<i64: 4, 8, 512>}]} {
    %c0 = arith.constant 0 : index
    %c0_0 = arith.constant 0 : index
    %0 = vector.load %arg2[%c0, %c0_0] : memref<8x1xf32, #tpu.memory_space<vmem>>, vector<8x1xf32>
    %1 = vector.shape_cast %0 : vector<8x1xf32> to vector<8x1xf32>
    %2 = vector.broadcast %1 : vector<8x1xf32> to vector<8x512xf32>
    %c0_1 = arith.constant 0 : index
    %c0_2 = arith.constant 0 : index
    %3 = vector.load %arg3[%c0_1, %c0_2] : memref<8x1xf32, #tpu.memory_space<vmem>>, vector<8x1xf32>
    %4 = vector.shape_cast %3 : vector<8x1xf32> to vector<8x1xf32>
    %5 = vector.broadcast %4 : vector<8x1xf32> to vector<8x512xf32>
    %cst = arith.constant 0.000000e+00 : f32
    %6 = vector.broadcast %cst : f32 to vector<8x512xf32>
    %c0_3 = arith.constant 0 : index
    %c0_4 = arith.constant 0 : index
    %c0_5 = arith.constant 0 : index
    %7 = vector.load %arg1[%c0_3, %c0_4, %c0_5] : memref<4x8x512xbf16, #tpu.memory_space<vmem>>, vector<1x8x512xbf16>
    %8 = vector.shape_cast %7 : vector<1x8x512xbf16> to vector<8x512xbf16>
    %9 = arith.extf %8 : vector<8x512xbf16> to vector<8x512xf32>
    %10 = arith.mulf %9, %2 : vector<8x512xf32>
    %11 = arith.addf %10, %5 : vector<8x512xf32>
    %c4_i32 = arith.constant 4 : i32
    %12 = tpu.dynamic_rotate %11 by %c4_i32 dim 0 : vector<8x512xf32>, i32 -> vector<8x512xf32>
    %13 = arith.addf %11, %12 : vector<8x512xf32>
    %cst_6 = arith.constant 2.000000e-01 : f32
    %14 = vector.broadcast %cst_6 : f32 to vector<8x512xf32>
    %15 = arith.mulf %6, %14 : vector<8x512xf32>
    %16 = arith.addf %15, %13 : vector<8x512xf32>
    %cst_7 = arith.constant 5.000000e-01 : f32
    %17 = vector.broadcast %cst_7 : f32 to vector<8x512xf32>
    %18 = arith.cmpf oge, %16, %17 : vector<8x512xf32>
    %19 = arith.extui %18 : vector<8x512xi1> to vector<8x512xi32>
    %20 = arith.sitofp %19 : vector<8x512xi32> to vector<8x512xf32>
    %c0_8 = arith.constant 0 : index
    %c0_9 = arith.constant 0 : index
    %c0_10 = arith.constant 0 : index
    %21 = vector.load %arg4[%c0_8, %c0_9, %c0_10] : memref<4x8x512xf32, #tpu.memory_space<vmem>>, vector<1x8x512xf32>
    %22 = vector.shape_cast %21 : vector<1x8x512xf32> to vector<8x512xf32>
    %23 = vector.shape_cast %20 : vector<8x512xf32> to vector<1x8x512xf32>
    tpu.vector_store %arg4[%c0_8, %c0_9, %c0_10], %23 {strides = array<i32>} : memref<4x8x512xf32, #tpu.memory_space<vmem>>, vector<1x8x512xf32>,
    %cst_11 = arith.constant 1.000000e+00 : f32
    %24 = vector.broadcast %cst_11 : f32 to vector<8x512xf32>
    %25 = arith.subf %24, %20 : vector<8x512xf32>
    %26 = arith.mulf %16, %25 : vector<8x512xf32>
    %c1 = arith.constant 1 : index
    %c0_12 = arith.constant 0 : index
    %c0_13 = arith.constant 0 : index
    %27 = vector.load %arg1[%c1, %c0_12, %c0_13] : memref<4x8x512xbf16, #tpu.memory_space<vmem>>, vector<1x8x512xbf16>
    %28 = vector.shape_cast %27 : vector<1x8x512xbf16> to vector<8x512xbf16>
    %29 = arith.extf %28 : vector<8x512xbf16> to vector<8x512xf32>
    %30 = arith.mulf %29, %2 : vector<8x512xf32>
    %31 = arith.addf %30, %5 : vector<8x512xf32>
    %c4_i32_14 = arith.constant 4 : i32
    %32 = tpu.dynamic_rotate %31 by %c4_i32_14 dim 0 : vector<8x512xf32>, i32 -> vector<8x512xf32>
    %33 = arith.addf %31, %32 : vector<8x512xf32>
    %cst_15 = arith.constant 2.000000e-01 : f32
    %34 = vector.broadcast %cst_15 : f32 to vector<8x512xf32>
    %35 = arith.mulf %26, %34 : vector<8x512xf32>
    %36 = arith.addf %35, %33 : vector<8x512xf32>
    %cst_16 = arith.constant 5.000000e-01 : f32
    %37 = vector.broadcast %cst_16 : f32 to vector<8x512xf32>
    %38 = arith.cmpf oge, %36, %37 : vector<8x512xf32>
    %39 = arith.extui %38 : vector<8x512xi1> to vector<8x512xi32>
    %40 = arith.sitofp %39 : vector<8x512xi32> to vector<8x512xf32>
    %c1_17 = arith.constant 1 : index
    %c0_18 = arith.constant 0 : index
    %c0_19 = arith.constant 0 : index
    %41 = vector.load %arg4[%c1_17, %c0_18, %c0_19] : memref<4x8x512xf32, #tpu.memory_space<vmem>>, vector<1x8x512xf32>
    %42 = vector.shape_cast %41 : vector<1x8x512xf32> to vector<8x512xf32>
    %43 = vector.shape_cast %40 : vector<8x512xf32> to vector<1x8x512xf32>
    tpu.vector_store %arg4[%c1_17, %c0_18, %c0_19], %43 {strides = array<i32>} : memref<4x8x512xf32, #tpu.memory_space<vmem>>, vector<1x8x512xf32>,
    %cst_20 = arith.constant 1.000000e+00 : f32
    %44 = vector.broadcast %cst_20 : f32 to vector<8x512xf32>
    %45 = arith.subf %44, %40 : vector<8x512xf32>
    %46 = arith.mulf %36, %45 : vector<8x512xf32>
    %c2 = arith.constant 2 : index
    %c0_21 = arith.constant 0 : index
    %c0_22 = arith.constant 0 : index
    %47 = vector.load %arg1[%c2, %c0_21, %c0_22] : memref<4x8x512xbf16, #tpu.memory_space<vmem>>, vector<1x8x512xbf16>
    %48 = vector.shape_cast %47 : vector<1x8x512xbf16> to vector<8x512xbf16>
    %49 = arith.extf %48 : vector<8x512xbf16> to vector<8x512xf32>
    %50 = arith.mulf %49, %2 : vector<8x512xf32>
    %51 = arith.addf %50, %5 : vector<8x512xf32>
    %c4_i32_23 = arith.constant 4 : i32
    %52 = tpu.dynamic_rotate %51 by %c4_i32_23 dim 0 : vector<8x512xf32>, i32 -> vector<8x512xf32>
    %53 = arith.addf %51, %52 : vector<8x512xf32>
    %cst_24 = arith.constant 2.000000e-01 : f32
    %54 = vector.broadcast %cst_24 : f32 to vector<8x512xf32>
    %55 = arith.mulf %46, %54 : vector<8x512xf32>
    %56 = arith.addf %55, %53 : vector<8x512xf32>
    %cst_25 = arith.constant 5.000000e-01 : f32
    %57 = vector.broadcast %cst_25 : f32 to vector<8x512xf32>
    %58 = arith.cmpf oge, %56, %57 : vector<8x512xf32>
    %59 = arith.extui %58 : vector<8x512xi1> to vector<8x512xi32>
    %60 = arith.sitofp %59 : vector<8x512xi32> to vector<8x512xf32>
    %c2_26 = arith.constant 2 : index
    %c0_27 = arith.constant 0 : index
    %c0_28 = arith.constant 0 : index
    %61 = vector.load %arg4[%c2_26, %c0_27, %c0_28] : memref<4x8x512xf32, #tpu.memory_space<vmem>>, vector<1x8x512xf32>
    %62 = vector.shape_cast %61 : vector<1x8x512xf32> to vector<8x512xf32>
    %63 = vector.shape_cast %60 : vector<8x512xf32> to vector<1x8x512xf32>
    tpu.vector_store %arg4[%c2_26, %c0_27, %c0_28], %63 {strides = array<i32>} : memref<4x8x512xf32, #tpu.memory_space<vmem>>, vector<1x8x512xf32>,
    %cst_29 = arith.constant 1.000000e+00 : f32
    %64 = vector.broadcast %cst_29 : f32 to vector<8x512xf32>
    %65 = arith.subf %64, %60 : vector<8x512xf32>
    %66 = arith.mulf %56, %65 : vector<8x512xf32>
    %c3 = arith.constant 3 : index
    %c0_30 = arith.constant 0 : index
    %c0_31 = arith.constant 0 : index
    %67 = vector.load %arg1[%c3, %c0_30, %c0_31] : memref<4x8x512xbf16, #tpu.memory_space<vmem>>, vector<1x8x512xbf16>
    %68 = vector.shape_cast %67 : vector<1x8x512xbf16> to vector<8x512xbf16>
    %69 = arith.extf %68 : vector<8x512xbf16> to vector<8x512xf32>
    %70 = arith.mulf %69, %2 : vector<8x512xf32>
    %71 = arith.addf %70, %5 : vector<8x512xf32>
    %c4_i32_32 = arith.constant 4 : i32
    %72 = tpu.dynamic_rotate %71 by %c4_i32_32 dim 0 : vector<8x512xf32>, i32 -> vector<8x512xf32>
    %73 = arith.addf %71, %72 : vector<8x512xf32>
    %cst_33 = arith.constant 2.000000e-01 : f32
    %74 = vector.broadcast %cst_33 : f32 to vector<8x512xf32>
    %75 = arith.mulf %66, %74 : vector<8x512xf32>
    %76 = arith.addf %75, %73 : vector<8x512xf32>
    %cst_34 = arith.constant 5.000000e-01 : f32
    %77 = vector.broadcast %cst_34 : f32 to vector<8x512xf32>
    %78 = arith.cmpf oge, %76, %77 : vector<8x512xf32>
    %79 = arith.extui %78 : vector<8x512xi1> to vector<8x512xi32>
    %80 = arith.sitofp %79 : vector<8x512xi32> to vector<8x512xf32>
    %c3_35 = arith.constant 3 : index
    %c0_36 = arith.constant 0 : index
    %c0_37 = arith.constant 0 : index
    %81 = vector.load %arg4[%c3_35, %c0_36, %c0_37] : memref<4x8x512xf32, #tpu.memory_space<vmem>>, vector<1x8x512xf32>
    %82 = vector.shape_cast %81 : vector<1x8x512xf32> to vector<8x512xf32>
    %83 = vector.shape_cast %80 : vector<8x512xf32> to vector<1x8x512xf32>
    tpu.vector_store %arg4[%c3_35, %c0_36, %c0_37], %83 {strides = array<i32>} : memref<4x8x512xf32, #tpu.memory_space<vmem>>, vector<1x8x512xf32>,
    return
  }
  func.func @transform_0(%arg0: i32) -> (i32, i32, i32) {
    %c0_i32 = arith.constant 0 : i32
    %c0_i32_0 = arith.constant 0 : i32
    %c0_i32_1 = arith.constant 0 : i32
    return %c0_i32, %c0_i32_0, %arg0 : i32, i32, i32
  }
  func.func @transform_1(%arg0: i32) -> (i32, i32) {
    %c0_i32 = arith.constant 0 : i32
    %c0_i32_0 = arith.constant 0 : i32
    %c0_i32_1 = arith.constant 0 : i32
    return %c0_i32, %c0_i32_0 : i32, i32
  }
  func.func @transform_2(%arg0: i32) -> (i32, i32) {
    %c0_i32 = arith.constant 0 : i32
    %c0_i32_0 = arith.constant 0 : i32
    %c0_i32_1 = arith.constant 0 : i32
    return %c0_i32, %c0_i32_0 : i32, i32
  }
  func.func @transform_3(%arg0: i32) -> (i32, i32, i32) {
    %c0_i32 = arith.constant 0 : i32
    %c0_i32_0 = arith.constant 0 : i32
    %c0_i32_1 = arith.constant 0 : i32
    return %c0_i32, %c0_i32_0, %arg0 : i32, i32, i32
  }
}

module attributes {stable_mosaic.version = 11 : i64} {
  func.func @_conv_bn_kernel(%arg0: i32, %arg1: i32, %arg2: memref<8x80xbf16, #tpu.memory_space<vmem>>, %arg3: memref<1x80x512xbf16, #tpu.memory_space<vmem>>, %arg4: memref<1x8x512xbf16, #tpu.memory_space<vmem>>, %arg5: memref<1x1x8x128xf32, #tpu.memory_space<vmem>>, %arg6: memref<1x1x8x128xf32, #tpu.memory_space<vmem>>) attributes {dimension_semantics = [#tpu.dimension_semantics<parallel>, #tpu.dimension_semantics<parallel>], iteration_bounds = array<i64: 4, 1>, scalar_prefetch = 0 : i64, scratch_operands = 0 : i64, tpu.core_type = #tpu.core_type<tc>, window_params = [{pipeline_mode = #tpu.pipeline_mode<synchronous>, transform_indices = @transform_0, window_bounds = array<i64: 8, 80>}, {transform_indices = @transform_1, window_bounds = array<i64: 1, 80, 512>}, {transform_indices = @transform_2, window_bounds = array<i64: 1, 8, 512>}, {transform_indices = @transform_3, window_bounds = array<i64: 1, 1, 8, 128>}, {transform_indices = @transform_4, window_bounds = array<i64: 1, 1, 8, 128>}]} {
    %c0 = arith.constant 0 : index
    %c0_0 = arith.constant 0 : index
    %0 = vector.load %arg2[%c0, %c0_0] : memref<8x80xbf16, #tpu.memory_space<vmem>>, vector<8x80xbf16>
    %c0_1 = arith.constant 0 : index
    %c0_2 = arith.constant 0 : index
    %c0_3 = arith.constant 0 : index
    %1 = vector.load %arg3[%c0_1, %c0_2, %c0_3] : memref<1x80x512xbf16, #tpu.memory_space<vmem>>, vector<1x80x512xbf16>
    %2 = vector.shape_cast %1 : vector<1x80x512xbf16> to vector<80x512xbf16>
    %cst = arith.constant dense<0.000000e+00> : vector<8x512xf32>
    %3 = tpu.matmul %0, %2, %cst {dimension_numbers = #tpu.dot_dimension_numbers<[1], [0], [0], [1], [0, 0, 1, 1], [], []>} : vector<8x80xbf16>, vector<80x512xbf16>, vector<8x512xf32> -> vector<8x512xf32>
    %4 = arith.truncf %3 : vector<8x512xf32> to vector<8x512xbf16>
    %c0_4 = arith.constant 0 : index
    %c0_5 = arith.constant 0 : index
    %c0_6 = arith.constant 0 : index
    %5 = vector.load %arg4[%c0_4, %c0_5, %c0_6] : memref<1x8x512xbf16, #tpu.memory_space<vmem>>, vector<1x8x512xbf16>
    %6 = vector.shape_cast %5 : vector<1x8x512xbf16> to vector<8x512xbf16>
    %7 = vector.shape_cast %4 : vector<8x512xbf16> to vector<1x8x512xbf16>
    tpu.vector_store %arg4[%c0_4, %c0_5, %c0_6], %7 {strides = array<i32>} : memref<1x8x512xbf16, #tpu.memory_space<vmem>>, vector<1x8x512xbf16>,
    %8 = arith.extf %4 : vector<8x512xbf16> to vector<8x512xf32>
    %9 = vector.extract_strided_slice %8 {offsets = [0, 0], sizes = [8, 128], strides = [1, 1]} : vector<8x512xf32> to vector<8x128xf32>
    %10 = vector.extract_strided_slice %8 {offsets = [0, 128], sizes = [8, 128], strides = [1, 1]} : vector<8x512xf32> to vector<8x128xf32>
    %11 = vector.extract_strided_slice %8 {offsets = [0, 256], sizes = [8, 128], strides = [1, 1]} : vector<8x512xf32> to vector<8x128xf32>
    %12 = vector.extract_strided_slice %8 {offsets = [0, 384], sizes = [8, 128], strides = [1, 1]} : vector<8x512xf32> to vector<8x128xf32>
    %13 = arith.mulf %9, %9 : vector<8x128xf32>
    %14 = arith.mulf %10, %10 : vector<8x128xf32>
    %15 = arith.mulf %11, %11 : vector<8x128xf32>
    %16 = arith.mulf %12, %12 : vector<8x128xf32>
    %17 = arith.addf %9, %10 : vector<8x128xf32>
    %18 = arith.addf %11, %12 : vector<8x128xf32>
    %19 = arith.addf %17, %18 : vector<8x128xf32>
    %c0_7 = arith.constant 0 : index
    %c0_8 = arith.constant 0 : index
    %c0_9 = arith.constant 0 : index
    %c0_10 = arith.constant 0 : index
    %20 = vector.load %arg5[%c0_7, %c0_8, %c0_9, %c0_10] : memref<1x1x8x128xf32, #tpu.memory_space<vmem>>, vector<1x1x8x128xf32>
    %21 = vector.shape_cast %20 : vector<1x1x8x128xf32> to vector<8x128xf32>
    %22 = vector.shape_cast %19 : vector<8x128xf32> to vector<1x1x8x128xf32>
    tpu.vector_store %arg5[%c0_7, %c0_8, %c0_9, %c0_10], %22 {strides = array<i32>} : memref<1x1x8x128xf32, #tpu.memory_space<vmem>>, vector<1x1x8x128xf32>,
    %23 = arith.addf %13, %14 : vector<8x128xf32>
    %24 = arith.addf %15, %16 : vector<8x128xf32>
    %25 = arith.addf %23, %24 : vector<8x128xf32>
    %c0_11 = arith.constant 0 : index
    %c0_12 = arith.constant 0 : index
    %c0_13 = arith.constant 0 : index
    %c0_14 = arith.constant 0 : index
    %26 = vector.load %arg6[%c0_11, %c0_12, %c0_13, %c0_14] : memref<1x1x8x128xf32, #tpu.memory_space<vmem>>, vector<1x1x8x128xf32>
    %27 = vector.shape_cast %26 : vector<1x1x8x128xf32> to vector<8x128xf32>
    %28 = vector.shape_cast %25 : vector<8x128xf32> to vector<1x1x8x128xf32>
    tpu.vector_store %arg6[%c0_11, %c0_12, %c0_13, %c0_14], %28 {strides = array<i32>} : memref<1x1x8x128xf32, #tpu.memory_space<vmem>>, vector<1x1x8x128xf32>,
    return
  }
  func.func @transform_0(%arg0: i32, %arg1: i32) -> (i32, i32) {
    %c0_i32 = arith.constant 0 : i32
    %c0_i32_0 = arith.constant 0 : i32
    %c0_i32_1 = arith.constant 0 : i32
    return %c0_i32, %c0_i32_0 : i32, i32
  }
  func.func @transform_1(%arg0: i32, %arg1: i32) -> (i32, i32, i32) {
    %c0_i32 = arith.constant 0 : i32
    %c0_i32_0 = arith.constant 0 : i32
    return %arg0, %c0_i32, %arg1 : i32, i32, i32
  }
  func.func @transform_2(%arg0: i32, %arg1: i32) -> (i32, i32, i32) {
    %c0_i32 = arith.constant 0 : i32
    %c0_i32_0 = arith.constant 0 : i32
    return %arg0, %c0_i32, %arg1 : i32, i32, i32
  }
  func.func @transform_3(%arg0: i32, %arg1: i32) -> (i32, i32, i32, i32) {
    %c0_i32 = arith.constant 0 : i32
    %c0_i32_0 = arith.constant 0 : i32
    %c0_i32_1 = arith.constant 0 : i32
    return %arg0, %arg1, %c0_i32, %c0_i32_0 : i32, i32, i32, i32
  }
  func.func @transform_4(%arg0: i32, %arg1: i32) -> (i32, i32, i32, i32) {
    %c0_i32 = arith.constant 0 : i32
    %c0_i32_0 = arith.constant 0 : i32
    %c0_i32_1 = arith.constant 0 : i32
    return %arg0, %arg1, %c0_i32, %c0_i32_0 : i32, i32, i32, i32
  }
}

</mosaic_0001>

<bundles_post_ra>
// kernel: cell_forward.4
= control target key start
LH: loop header
LB: loop body
LE: loop exit
PB: predicated region body
PF: predicated region fallthrough
CT: control target
= control target key end

     0   :  { %s1219_s15 = smov 0   ;;  %s1221_s16 = smov 0   ;;  %s1327_s0 = inlined_call_operand.vmem [shape: bf16[16,224], index: 0, kind: input, shape index: {}]   ;;  %s1328_s1 = inlined_call_operand.vmem [shape: bf16[4,224,512], index: 1, kind: input, shape index: {}]   ;;  %s1329_s2 = inlined_call_operand.vmem [shape: bf16[4,16,512], index: 2, kind: output, shape index: {0}]   ;;  %s1330_s3 = inlined_call_operand.vmem [shape: f32[4,1,16,128], index: 3, kind: output, shape index: {1}]   ;;  %s1331_s4 = inlined_call_operand.vmem [shape: f32[4,1,16,128], index: 4, kind: output, shape index: {2}]  }
   0x1   :  { %s1223_s17 = smov 0  }
   0x2 LB: > { %s27_s18 = sadd.s32 1, %s1188_s16  ;;  %p977_p0 = scmp.ge.s32.totalorder %s1192_s17, 1  ;;  %s1192_s17 = sphi %s1223_s17, %s15_s17   ;;  %s1188_s16 = sphi %s1221_s16, %s1333_s16   ;;  %s1184_s15 = sphi %s1219_s15, %s1332_s15  }
   0x3   : > { %p29_p1 = scmp.ge.s32.totalorder %s27_s18, 4  ;;  %p192_p2 = scmp.lt.s32.totalorder %s1192_s17, 5 }
   0x5   : > { %s1335_s18 = smov (%p29_p1, %s27_s18), 0  ;;  %p193_p3 = pnand %p977_p0, %p192_p2 }
   0x6   : > { %p245_p4 = scmp.lt.s32.totalorder (!%p193_p3), %s1184_s15, 3  ;;  %vm630_vm0 = vcmask (!%p193_p3), 785408   ;;  %v1169_v0 = vld [vmem:[%s1327_s0 + $0x4] ss:$8 sps:$4 sm:$0xff] (!%p193_p3)   ;;  %v1167_v57 = vld [vmem:[%s1327_s0] ss:$8 sps:$4 sm:$0xff] (!%p193_p3)  }
   0x7   : > { %196 = sbr.rel (%p193_p3) target bundleno = 302 (0x12e), region = 28  ;;  %1043 = vmatprep.mubr.msk.bf16.mxu0 (!%p193_p3), %vm630_vm0, %v1169_v0  ;;  %1044 = vmatprep.mubr.msk.bf16.mxu1 (!%p193_p3), %vm630_vm0, %v1169_v0 }
   0xe   : > { %s1337_s15 = smov (!%p245_p4, %s1184_s15), 3 }
   0xf   : > { %s1058_s21 = smul.u32 448, %s1337_s15  ;;  %s1051_s27 = sshll.u32 %s1337_s15, 5 }
  0x10   : > { %s262_s30 = scalar_lea.vmem %s1329_s2, %s1051_s27  ;;  %s1052_s5 = sshll.u32 %s1337_s15, 4 }
  0x11   : > { %s1246_s24 = scalar_lea.vmem %s1328_s1, %s1058_s21  ;;  %s272_s8 = scalar_lea.vmem %s1330_s3, %s1052_s5 }
  0x12   : > { %v1083_v1 = vld [vmem:[%s1246_s24 + $0x4] ss:$16 sps:$4 sm:$0xff]   ;;  %v1085_v2 = vld [vmem:[%s1246_s24 + $0xc] ss:$16 sps:$4 sm:$0xff]   ;;  %v1087_v3 = vld [vmem:[%s1246_s24] ss:$16 sps:$4 sm:$0xff]   ;;  %s281_s11 = scalar_lea.vmem %s1331_s4, %s1052_s5 }
  0x13   : > { %634 = vmatprep.subr.bf16.mxu0 %v1083_v1  ;;  %v1088_v4 = vld [vmem:[%s1246_s24 + $0x8] ss:$16 sps:$4 sm:$0xff]   ;;  %677 = vmatprep.subr.bf16.mxu1 %v1085_v2  ;;  %v1089_v5 = vld [vmem:[%s1246_s24 + $0x24] ss:$16 sps:$4 sm:$0xff]   ;;  %v1091_v6 = vld [vmem:[%s1246_s24 + $0x2c] ss:$16 sps:$4 sm:$0xff]  }
  0x14   : > { %635 = vmatpush1.bf16.msra.mxu0 %v1087_v3  ;;  %678 = vmatpush1.bf16.msra.mxu1 %v1088_v4  ;;  %v1093_v7 = vld [vmem:[%s1246_s24 + $0x20] ss:$16 sps:$4 sm:$0xff]   ;;  %v1094_v8 = vld [vmem:[%s1246_s24 + $0x28] ss:$16 sps:$4 sm:$0xff]   ;;  %v1095_v9 = vld [vmem:[%s1246_s24 + $0x44] ss:$16 sps:$4 sm:$0xff]  }
  0x15   : > { %636 = vmatprep.subr.bf16.mxu0 %v1089_v5  ;;  %679 = vmatprep.subr.bf16.mxu1 %v1091_v6  ;;  %v1097_v10 = vld [vmem:[%s1246_s24 + $0x4c] ss:$16 sps:$4 sm:$0xff]   ;;  %v1099_v11 = vld [vmem:[%s1246_s24 + $0x40] ss:$16 sps:$4 sm:$0xff]   ;;  %v1100_v12 = vld [vmem:[%s1246_s24 + $0x48] ss:$16 sps:$4 sm:$0xff]  }
  0x16   : > { %v1101_v13 = vld [vmem:[%s1246_s24 + $0x64] ss:$16 sps:$4 sm:$0xff]   ;;  %v1103_v14 = vld [vmem:[%s1246_s24 + $0x6c] ss:$16 sps:$4 sm:$0xff]   ;;  %v1105_v15 = vld [vmem:[%s1246_s24 + $0x60] ss:$16 sps:$4 sm:$0xff]  }
  0x17   : > { %v1106_v16 = vld [vmem:[%s1246_s24 + $0x68] ss:$16 sps:$4 sm:$0xff]   ;;  %v1107_v17 = vld [vmem:[%s1246_s24 + $0x84] ss:$16 sps:$4 sm:$0xff]   ;;  %v1109_v18 = vld [vmem:[%s1246_s24 + $0x8c] ss:$16 sps:$4 sm:$0xff]  }
  0x18   : > { %637 = vmatpush1.bf16.msra.mxu0 %v1093_v7  ;;  %680 = vmatpush1.bf16.msra.mxu1 %v1094_v8  ;;  %v1111_v19 = vld [vmem:[%s1246_s24 + $0x80] ss:$16 sps:$4 sm:$0xff]   ;;  %v1112_v20 = vld [vmem:[%s1246_s24 + $0x88] ss:$16 sps:$4 sm:$0xff]   ;;  %v1113_v21 = vld [vmem:[%s1246_s24 + $0xa4] ss:$16 sps:$4 sm:$0xff]  }
  0x19   : > { %638 = vmatprep.subr.bf16.mxu0 %v1095_v9  ;;  %681 = vmatprep.subr.bf16.mxu1 %v1097_v10  ;;  %v1115_v22 = vld [vmem:[%s1246_s24 + $0xac] ss:$16 sps:$4 sm:$0xff]   ;;  %v1117_v23 = vld [vmem:[%s1246_s24 + $0xa0] ss:$16 sps:$4 sm:$0xff]   ;;  %v1118_v24 = vld [vmem:[%s1246_s24 + $0xa8] ss:$16 sps:$4 sm:$0xff]  }
  0x1a   : > { %v1119_v25 = vld [vmem:[%s1246_s24 + $0xc4] ss:$16 sps:$4 sm:$0xff]   ;;  %v1121_v26 = vld [vmem:[%s1246_s24 + $0xcc] ss:$16 sps:$4 sm:$0xff]   ;;  %v1123_v27 = vld [vmem:[%s1246_s24 + $0xc0] ss:$16 sps:$4 sm:$0xff]  }
  0x1b   : > { %v1124_v28 = vld [vmem:[%s1246_s24 + $0xc8] ss:$16 sps:$4 sm:$0xff]   ;;  %v1125_v29 = vld [vmem:[%s1246_s24 + $0xe4] ss:$16 sps:$4 sm:$0xff]   ;;  %v1127_v30 = vld [vmem:[%s1246_s24 + $0xec] ss:$16 sps:$4 sm:$0xff]  }
  0x1c   : > { %639 = vmatpush1.bf16.msra.mxu0 %v1099_v11  ;;  %682 = vmatpush1.bf16.msra.mxu1 %v1100_v12  ;;  %v1129_v31 = vld [vmem:[%s1246_s24 + $0xe0] ss:$16 sps:$4 sm:$0xff]   ;;  %v1130_v32 = vld [vmem:[%s1246_s24 + $0xe8] ss:$16 sps:$4 sm:$0xff]   ;;  %v1131_v33 = vld [vmem:[%s1246_s24 + $0x104] ss:$16 sps:$4 sm:$0xff]  }
  0x1d   : > { %640 = vmatprep.subr.bf16.mxu0 %v1101_v13  ;;  %683 = vmatprep.subr.bf16.mxu1 %v1103_v14  ;;  %v1133_v34 = vld [vmem:[%s1246_s24 + $0x10c] ss:$16 sps:$4 sm:$0xff]   ;;  %v1135_v35 = vld [vmem:[%s1246_s24 + $0x100] ss:$16 sps:$4 sm:$0xff]   ;;  %v1136_v36 = vld [vmem:[%s1246_s24 + $0x108] ss:$16 sps:$4 sm:$0xff]  }
  0x1e   : > { %v1137_v37 = vld [vmem:[%s1246_s24 + $0x124] ss:$16 sps:$4 sm:$0xff]   ;;  %v1139_v38 = vld [vmem:[%s1246_s24 + $0x12c] ss:$16 sps:$4 sm:$0xff]   ;;  %v1141_v39 = vld [vmem:[%s1246_s24 + $0x120] ss:$16 sps:$4 sm:$0xff]  }
  0x1f   : > { %v1142_v40 = vld [vmem:[%s1246_s24 + $0x128] ss:$16 sps:$4 sm:$0xff]   ;;  %v1143_v41 = vld [vmem:[%s1246_s24 + $0x144] ss:$16 sps:$4 sm:$0xff]   ;;  %v1145_v42 = vld [vmem:[%s1246_s24 + $0x14c] ss:$16 sps:$4 sm:$0xff]  }
  0x20   : > { %641 = vmatpush1.bf16.msra.mxu0 %v1105_v15  ;;  %684 = vmatpush1.bf16.msra.mxu1 %v1106_v16  ;;  %v1147_v43 = vld [vmem:[%s1246_s24 + $0x140] ss:$16 sps:$4 sm:$0xff]   ;;  %v1148_v44 = vld [vmem:[%s1246_s24 + $0x148] ss:$16 sps:$4 sm:$0xff]   ;;  %v1149_v45 = vld [vmem:[%s1246_s24 + $0x164] ss:$16 sps:$4 sm:$0xff]  }
  0x21   : > { %642 = vmatprep.subr.bf16.mxu0 %v1107_v17  ;;  %685 = vmatprep.subr.bf16.mxu1 %v1109_v18  ;;  %v1151_v46 = vld [vmem:[%s1246_s24 + $0x16c] ss:$16 sps:$4 sm:$0xff]   ;;  %v1153_v47 = vld [vmem:[%s1246_s24 + $0x160] ss:$16 sps:$4 sm:$0xff]   ;;  %v1154_v48 = vld [vmem:[%s1246_s24 + $0x168] ss:$16 sps:$4 sm:$0xff]  }
  0x22   : > { %v1155_v49 = vld [vmem:[%s1246_s24 + $0x184] ss:$16 sps:$4 sm:$0xff]   ;;  %v1157_v50 = vld [vmem:[%s1246_s24 + $0x18c] ss:$16 sps:$4 sm:$0xff]   ;;  %v1159_v51 = vld [vmem:[%s1246_s24 + $0x180] ss:$16 sps:$4 sm:$0xff]  }
  0x23   : > { %v1160_v52 = vld [vmem:[%s1246_s24 + $0x188] ss:$16 sps:$4 sm:$0xff]   ;;  %v1161_v53 = vld [vmem:[%s1246_s24 + $0x1a4] ss:$16 sps:$4 sm:$0xff]   ;;  %v1163_v54 = vld [vmem:[%s1246_s24 + $0x1ac] ss:$16 sps:$4 sm:$0xff]  }
  0x24   : > { %643 = vmatpush1.bf16.msra.mxu0 %v1111_v19  ;;  %686 = vmatpush1.bf16.msra.mxu1 %v1112_v20  ;;  %v1165_v55 = vld [vmem:[%s1246_s24 + $0x1a0] ss:$16 sps:$4 sm:$0xff]   ;;  %v1166_v56 = vld [vmem:[%s1246_s24 + $0x1a8] ss:$16 sps:$4 sm:$0xff]  }
  0x25   : > { %644 = vmatprep.subr.bf16.mxu0 %v1113_v21  ;;  %687 = vmatprep.subr.bf16.mxu1 %v1115_v22 }
  0x28   : > { %645 = vmatpush1.bf16.msra.mxu0 %v1117_v23  ;;  %688 = vmatpush1.bf16.msra.mxu1 %v1118_v24 }
  0x29   : > { %646 = vmatprep.subr.bf16.mxu0 %v1119_v25  ;;  %689 = vmatprep.subr.bf16.mxu1 %v1121_v26 }
  0x2c   : > { %647 = vmatpush1.bf16.msra.mxu0 %v1123_v27  ;;  %690 = vmatpush1.bf16.msra.mxu1 %v1124_v28 }
  0x2d   : > { %648 = vmatprep.subr.bf16.mxu0 %v1125_v29  ;;  %691 = vmatprep.subr.bf16.mxu1 %v1127_v30 }
  0x30   : > { %649 = vmatpush1.bf16.msra.mxu0 %v1129_v31  ;;  %692 = vmatpush1.bf16.msra.mxu1 %v1130_v32 }
  0x31   : > { %650 = vmatprep.subr.bf16.mxu0 %v1131_v33  ;;  %693 = vmatprep.subr.bf16.mxu1 %v1133_v34 }
  0x34   : > { %651 = vmatpush1.bf16.msra.mxu0 %v1135_v35  ;;  %694 = vmatpush1.bf16.msra.mxu1 %v1136_v36 }
  0x35   : > { %652 = vmatprep.subr.bf16.mxu0 %v1137_v37  ;;  %695 = vmatprep.subr.bf16.mxu1 %v1139_v38 }
  0x38   : > { %653 = vmatpush1.bf16.msra.mxu0 %v1141_v39  ;;  %696 = vmatpush1.bf16.msra.mxu1 %v1142_v40 }
  0x39   : > { %654 = vmatprep.subr.bf16.mxu0 %v1143_v41  ;;  %697 = vmatprep.subr.bf16.mxu1 %v1145_v42 }
  0x3c   : > { %655 = vmatpush1.bf16.msra.mxu0 %v1147_v43  ;;  %698 = vmatpush1.bf16.msra.mxu1 %v1148_v44 }
  0x3d   : > { %656 = vmatprep.subr.bf16.mxu0 %v1149_v45  ;;  %699 = vmatprep.subr.bf16.mxu1 %v1151_v46 }
  0x40   : > { %657 = vmatpush1.bf16.msra.mxu0 %v1153_v47  ;;  %700 = vmatpush1.bf16.msra.mxu1 %v1154_v48 }
  0x41   : > { %658 = vmatprep.subr.bf16.mxu0 %v1155_v49  ;;  %701 = vmatprep.subr.bf16.mxu1 %v1157_v50 }
  0x44   : > { %659 = vmatpush1.bf16.msra.mxu0 %v1159_v51  ;;  %702 = vmatpush1.bf16.msra.mxu1 %v1160_v52 }
  0x45   : > { %660 = vmatprep.subr.bf16.mxu0 %v1161_v53  ;;  %703 = vmatprep.subr.bf16.mxu1 %v1163_v54 }
  0x48   : > { %661 = vmatpush1.bf16.msra.mxu0 %v1165_v55  ;;  %704 = vmatpush1.bf16.msra.mxu1 %v1166_v56 }
  0x4b   : > { %667 = vmatmul.mubr.bf16.vlgmr.msra.gmra.mrb[0].mxu0 %v1167_v57  ;;  %710 = vmatmul.mubr.bf16.vlgmr.msra.gmra.mrb[0].mxu1 %v1167_v57 }
 0x11e   : > { %v668_v58 = vpop.f32.mrb[0].mxu0  ;;  %v711_v59 = vpop.f32.mrb[0].mxu1 }
 0x11f   : > { %v670_v60 = vpop.f32.mrb[1].mxu0  ;;  %v713_v61 = vpop.f32.mrb[1].mxu1 }
 0x120   : > { %v1054_v62 = vpack.c.bf16 %v670_v60, %v668_v58  ;;  %v1055_v63 = vpack.c.bf16 %v713_v61, %v711_v59  ;;  %v672_v0 = vpop.f32.mrb[2].mxu0  ;;  %v715_v1 = vpop.f32.mrb[2].mxu1 }
 0x121   : > { %v720_v2 = vpack.c.bf16 %v672_v0, %v668_v58  ;;  %v722_v3 = vpack.c.bf16 %v715_v1, %v711_v59  ;;  %v674_v4 = vpop.f32.mrb[3].mxu0  ;;  %v717_v5 = vpop.f32.mrb[3].mxu1 }
 0x122   : > { %744 = vst [vmem:[%s262_s30] sm:$0xff] %v1054_v62  ;;  %745 = vst [vmem:[%s262_s30 + $0x8] sm:$0xff] %v1055_v63  ;;  %v721_v6 = vpack.c.bf16 %v674_v4, %v670_v60  ;;  %v1056_v7 = vpack.c.bf16 %v674_v4, %v672_v0  ;;  %v723_v8 = vpack.c.bf16 %v717_v5, %v713_v61 }
 0x123   : > { %v1057_v9 = vpack.c.bf16 %v717_v5, %v715_v1  ;;  %v748_v10 = vunpack.c.l.bf16 %v720_v2  ;;  %v752_v11 = vunpack.c.h.bf16 %v720_v2  ;;  %v750_v12 = vunpack.c.l.bf16 %v722_v3 }
 0x124   : > { %v754_v13 = vunpack.c.h.bf16 %v722_v3  ;;  %746 = vst [vmem:[%s262_s30 + $0x10] sm:$0xff] %v1056_v7  ;;  %v749_v14 = vunpack.c.l.bf16 %v721_v6  ;;  %v753_v15 = vunpack.c.h.bf16 %v721_v6  ;;  %v751_v16 = vunpack.c.l.bf16 %v723_v8 }
 0x125   : > { %747 = vst [vmem:[%s262_s30 + $0x18] sm:$0xff] %v1057_v9  ;;  %v755_v17 = vunpack.c.h.bf16 %v723_v8  ;;  %v756_v18 = vmul.f32 %v748_v10, %v748_v10  ;;  %v757_v19 = vmul.f32 %v752_v11, %v752_v11  ;;  %v760_v20 = vmul.f32 %v750_v12, %v750_v12 }
 0x126   : > { %v761_v21 = vmul.f32 %v754_v13, %v754_v13  ;;  %v758_v22 = vmul.f32 %v749_v14, %v749_v14  ;;  %v759_v23 = vmul.f32 %v753_v15, %v753_v15  ;;  %v764_v24 = vadd.f32 %v749_v14, %v748_v10 }
 0x127   : > { %v765_v25 = vadd.f32 %v753_v15, %v752_v11  ;;  %v762_v26 = vmul.f32 %v751_v16, %v751_v16  ;;  %v763_v27 = vmul.f32 %v755_v17, %v755_v17  ;;  %v766_v28 = vadd.f32 %v751_v16, %v750_v12 }
 0x128   : > { %v767_v29 = vadd.f32 %v755_v17, %v754_v13  ;;  %v772_v30 = vadd.f32 %v758_v22, %v756_v18  ;;  %v773_v31 = vadd.f32 %v759_v23, %v757_v19 }
 0x129   : > { %v768_v32 = vadd.f32 %v766_v28, %v764_v24  ;;  %v774_v34 = vadd.f32 %v762_v26, %v760_v20  ;;  %v775_v35 = vadd.f32 %v763_v27, %v761_v21 }
 0x12a   : > { %v769_v33 = vadd.f32 %v767_v29, %v765_v25 }
 0x12b   : > { %770 = vst [vmem:[%s272_s8] sm:$0xff] %v768_v32  ;;  %v776_v36 = vadd.f32 %v774_v34, %v772_v30  ;;  %v777_v37 = vadd.f32 %v775_v35, %v773_v31 }
 0x12c   : > { %771 = vst [vmem:[%s272_s8 + $0x8] sm:$0xff] %v769_v33 }
 0x12d   : > { %778 = vst [vmem:[%s281_s11] sm:$0xff] %v776_v36  ;;  %779 = vst [vmem:[%s281_s11 + $0x8] sm:$0xff] %v777_v37 }
 0x12e PF: > { %s15_s17 = sadd.s32 1, %s1192_s17   ;;  %s1332_s15 = smov %s1188_s16 }
 0x12f   : > { %p12_p5 = scmp.ge.s32.totalorder %s15_s17, 6   ;;  %s1333_s16 = smov %s1335_s18 }
 0x131   :  { %14 = sbr.rel (!%p12_p5) target bundleno = 2 (0x2), region = 82 }

// kernel: cell_forward.5
= control target key start
LH: loop header
LB: loop body
LE: loop exit
PB: predicated region body
PF: predicated region fallthrough
CT: control target
= control target key end

     0   :  { %v336_v0 = vmov 0   ;;  %s630_s2 = inlined_call_operand.vmem [shape: f32[16,1], index: 2, kind: input, shape index: {}]   ;;  %s631_s1 = inlined_call_operand.vmem [shape: f32[16,1], index: 1, kind: input, shape index: {}]   ;;  %s632_s0 = inlined_call_operand.vmem [shape: bf16[4,16,512], index: 0, kind: input, shape index: {}]   ;;  %s633_s3 = inlined_call_operand.vmem [shape: f32[4,8,512], index: 3, kind: output, shape index: {}]  }
   0x1   :  { %335 = vset.pattern.permute.xlu1 %v336_v0  ;;  %334 = vset.pattern.permute.xlu0 %v336_v0  ;;  %v26_v1 = vld [vmem:[%s630_s2] sm:$0xff]  ;;  %v27_v3 = vld [vmem:[%s630_s2 + $0x8] sm:$0xff]  ;;  %v379_v7 = vld [vmem:[%s632_s0 + $0x10] sm:$0xff] }
   0x2   :  { %v14_v2 = vld [vmem:[%s631_s1] sm:$0xff]  ;;  %30 = vperm.xlu1 %335, %v26_v1   ;;  %v15_v4 = vld [vmem:[%s631_s1 + $0x8] sm:$0xff]  ;;  %v384_v8 = vld [vmem:[%s632_s0 + $0x18] sm:$0xff]  ;;  %v46_v16 = vunpack.c.l.bf16 %v379_v7  ;;  %v47_v17 = vunpack.c.h.bf16 %v379_v7 }
   0x3   :  { %18 = vperm.xlu0 %334, %v14_v2   ;;  %v38_v5 = vld [vmem:[%s632_s0] sm:$0xff]  ;;  %v39_v6 = vld [vmem:[%s632_s0 + $0x8] sm:$0xff]  ;;  %v395_v14 = vld [vmem:[%s632_s0 + $0x30] sm:$0xff]  ;;  %v48_v18 = vunpack.c.l.bf16 %v384_v8  ;;  %v49_v21 = vunpack.c.h.bf16 %v384_v8 }
   0x4   :  { %v296_v9 = vld [vmem:[%s632_s0 + $0x20] sm:$0xff]  ;;  %v42_v10 = vunpack.c.l.bf16 %v38_v5  ;;  %v43_v11 = vunpack.c.h.bf16 %v38_v5  ;;  %v44_v12 = vunpack.c.l.bf16 %v39_v6  ;;  %v297_v13 = vld [vmem:[%s632_s0 + $0x28] sm:$0xff]  ;;  %v45_v15 = vunpack.c.h.bf16 %v39_v6  ;;  %v299_v19 = vld [vmem:[%s632_s0 + $0x38] sm:$0xff] }
   0x5   :  { %v406_v20 = vld [vmem:[%s632_s0 + $0x40] sm:$0xff]  ;;  %v103_v22 = vunpack.c.l.bf16 %v296_v9  ;;  %v104_v23 = vunpack.c.h.bf16 %v296_v9  ;;  %v412_v24 = vld [vmem:[%s632_s0 + $0x48] sm:$0xff]  ;;  %v417_v25 = vld [vmem:[%s632_s0 + $0x50] sm:$0xff]  ;;  %v105_v26 = vunpack.c.l.bf16 %v297_v13  ;;  %v106_v27 = vunpack.c.h.bf16 %v297_v13 }
   0x6   :  { %35 = vperm.xlu1 %335, %v27_v3   ;;  %v107_v28 = vunpack.c.l.bf16 %v395_v14  ;;  %v108_v29 = vunpack.c.h.bf16 %v395_v14  ;;  %v424_v30 = vld [vmem:[%s632_s0 + $0x58] sm:$0xff]  ;;  %v429_v31 = vld [vmem:[%s632_s0 + $0x60] sm:$0xff]  ;;  %v109_v32 = vunpack.c.l.bf16 %v299_v19  ;;  %v110_v33 = vunpack.c.h.bf16 %v299_v19  ;;  %v436_v36 = vld [vmem:[%s632_s0 + $0x68] sm:$0xff] }
   0x7   :  { %23 = vperm.xlu0 %334, %v15_v4   ;;  %v169_v34 = vunpack.c.l.bf16 %v406_v20  ;;  %v170_v35 = vunpack.c.h.bf16 %v406_v20  ;;  %v441_v37 = vld [vmem:[%s632_s0 + $0x70] sm:$0xff]  ;;  %v171_v38 = vunpack.c.l.bf16 %v412_v24  ;;  %v172_v39 = vunpack.c.h.bf16 %v412_v24  ;;  %v452_v44 = vld [vmem:[%s632_s0 + $0x78] sm:$0xff] }
   0x8   :  { %v173_v40 = vunpack.c.l.bf16 %v417_v25  ;;  %v174_v41 = vunpack.c.h.bf16 %v417_v25  ;;  %v175_v42 = vunpack.c.l.bf16 %v424_v30  ;;  %v176_v43 = vunpack.c.h.bf16 %v424_v30 }
   0x9   :  { %v235_v45 = vunpack.c.l.bf16 %v429_v31  ;;  %v236_v46 = vunpack.c.h.bf16 %v429_v31  ;;  %v237_v49 = vunpack.c.l.bf16 %v436_v36  ;;  %v238_v50 = vunpack.c.h.bf16 %v436_v36 }
   0xa   :  { %v239_v51 = vunpack.c.l.bf16 %v441_v37  ;;  %v240_v52 = vunpack.c.h.bf16 %v441_v37  ;;  %v241_v59 = vunpack.c.l.bf16 %v452_v44  ;;  %v242_v60 = vunpack.c.h.bf16 %v452_v44 }
  0x81   :  { %v456_v47 = vpop.permute.xlu1 %30 }
  0x82   :  { %v458_v48 = vpop.permute.xlu0 %18 }
  0x83   :  { %v50_v53 = vmul.f32 %v42_v10, %v458_v48  ;;  %v51_v54 = vmul.f32 %v43_v11, %v458_v48  ;;  %v52_v55 = vmul.f32 %v44_v12, %v458_v48  ;;  %v53_v56 = vmul.f32 %v45_v15, %v458_v48 }
  0x84   :  { %v111_v57 = vmul.f32 %v103_v22, %v458_v48  ;;  %v112_v58 = vmul.f32 %v104_v23, %v458_v48  ;;  %v113_v63 = vmul.f32 %v105_v26, %v458_v48  ;;  %v114_v0 = vmul.f32 %v106_v27, %v458_v48 }
  0x85   :  { %v58_v61 = vadd.f32 %v50_v53, %v456_v47  ;;  %v59_v62 = vadd.f32 %v51_v54, %v456_v47  ;;  %v60_v2 = vadd.f32 %v52_v55, %v456_v47  ;;  %v61_v3 = vadd.f32 %v53_v56, %v456_v47  ;;  %v486_v10 = vpop.permute.xlu1 %35 }
  0x86   :  { %v476_v1 = vpop.permute.xlu0 %23  ;;  %v119_v4 = vadd.f32 %v111_v57, %v456_v47  ;;  %v120_v5 = vadd.f32 %v112_v58, %v456_v47  ;;  %v121_v19 = vadd.f32 %v113_v63, %v456_v47  ;;  %v337_v55 = vmov 0.0  }
  0x87   :  { %v54_v6 = vmul.f32 %v46_v16, %v476_v1  ;;  %v55_v7 = vmul.f32 %v47_v17, %v476_v1  ;;  %v56_v8 = vmul.f32 %v48_v18, %v476_v1  ;;  %v57_v9 = vmul.f32 %v49_v21, %v476_v1 }
  0x88   :  { %v115_v11 = vmul.f32 %v107_v28, %v476_v1  ;;  %v116_v12 = vmul.f32 %v108_v29, %v476_v1  ;;  %v117_v13 = vmul.f32 %v109_v32, %v476_v1  ;;  %v118_v14 = vmul.f32 %v110_v33, %v476_v1 }
  0x89   :  { %v62_v15 = vadd.f32 %v54_v6, %v486_v10  ;;  %v63_v16 = vadd.f32 %v55_v7, %v486_v10  ;;  %v64_v17 = vadd.f32 %v56_v8, %v486_v10  ;;  %v65_v18 = vadd.f32 %v57_v9, %v486_v10 }
  0x8a   :  { %v122_v21 = vadd.f32 %v114_v0, %v456_v47  ;;  %v123_v22 = vadd.f32 %v115_v11, %v486_v10  ;;  %v124_v23 = vadd.f32 %v116_v12, %v486_v10  ;;  %v125_v32 = vadd.f32 %v117_v13, %v486_v10 }
  0x8b   :  { %v66_v26 = vadd.f32 %v62_v15, %v58_v61  ;;  %v67_v27 = vadd.f32 %v63_v16, %v59_v62  ;;  %v68_v28 = vadd.f32 %v64_v17, %v60_v2  ;;  %v69_v29 = vadd.f32 %v65_v18, %v61_v3 }
  0x8c   :  { %v126_v33 = vadd.f32 %v118_v14, %v486_v10  ;;  %v127_v53 = vadd.f32 %v123_v22, %v119_v4  ;;  %v128_v54 = vadd.f32 %v124_v23, %v120_v5  ;;  %v129_v3 = vadd.f32 %v125_v32, %v121_v19 }
  0x8d   :  { %vm74_vm0 = vcmp.ge.f32.partialorder %v66_v26, 0.5  ;;  %vm75_vm1 = vcmp.ge.f32.partialorder %v67_v27, 0.5  ;;  %vm76_vm2 = vcmp.ge.f32.partialorder %v68_v28, 0.5  ;;  %vm77_vm3 = vcmp.ge.f32.partialorder %v69_v29, 0.5 }
  0x8e   :  { %v292_v56 = vsel %vm74_vm0, 1.0, %v337_v55  ;;  %v293_v57 = vsel %vm75_vm1, 1.0, %v337_v55  ;;  %v294_v58 = vsel %vm76_vm2, 1.0, %v337_v55  ;;  %v295_v61 = vsel %vm77_vm3, 1.0, %v337_v55 }
  0x8f   :  { %86 = vst [vmem:[%s633_s3] sm:$0xff] %v292_v56  ;;  %87 = vst [vmem:[%s633_s3 + $0x8] sm:$0xff] %v293_v57  ;;  %v90_v62 = vsub.f32 1.0, %v292_v56  ;;  %v91_v63 = vsub.f32 1.0, %v293_v57  ;;  %v92_v0 = vsub.f32 1.0, %v294_v58  ;;  %v93_v2 = vsub.f32 1.0, %v295_v61 }
  0x90   :  { %88 = vst [vmem:[%s633_s3 + $0x10] sm:$0xff] %v294_v58  ;;  %89 = vst [vmem:[%s633_s3 + $0x18] sm:$0xff] %v295_v61  ;;  %v177_v4 = vmul.f32 %v169_v34, %v458_v48  ;;  %v178_v5 = vmul.f32 %v170_v35, %v458_v48  ;;  %v179_v6 = vmul.f32 %v171_v38, %v458_v48 }
  0x91   :  { %v94_v7 = vmul.f32 %v90_v62, %v66_v26  ;;  %v95_v8 = vmul.f32 %v91_v63, %v67_v27  ;;  %v96_v9 = vmul.f32 %v92_v0, %v68_v28  ;;  %v97_v11 = vmul.f32 %v93_v2, %v69_v29 }
  0x92   :  { %v130_v12 = vadd.f32 %v126_v33, %v122_v21  ;;  %v181_v13 = vmul.f32 %v173_v40, %v476_v1  ;;  %v182_v34 = vmul.f32 %v174_v41, %v476_v1  ;;  %v183_v20 = vmul.f32 %v175_v42, %v476_v1 }
  0x93   :  { %v131_v35 = vmul.f32 0.2, %v94_v7  ;;  %v132_v14 = vmul.f32 0.2, %v95_v8  ;;  %v133_v38 = vmul.f32 0.2, %v96_v9  ;;  %v184_v15 = vmul.f32 %v176_v43, %v476_v1 }
  0x94   :  { %v134_v16 = vmul.f32 0.2, %v97_v11  ;;  %v180_v40 = vmul.f32 %v172_v39, %v458_v48  ;;  %v185_v17 = vadd.f32 %v177_v4, %v456_v47  ;;  %v186_v25 = vadd.f32 %v178_v5, %v456_v47 }
  0x95   :  { %v135_v41 = vadd.f32 %v131_v35, %v127_v53  ;;  %v136_v18 = vadd.f32 %v132_v14, %v128_v54  ;;  %v137_v19 = vadd.f32 %v133_v38, %v129_v3  ;;  %v187_v42 = vadd.f32 %v179_v6, %v456_v47 }
  0x96   :  { %v138_v21 = vadd.f32 %v134_v16, %v130_v12  ;;  %v189_v22 = vadd.f32 %v181_v13, %v486_v10  ;;  %v190_v30 = vadd.f32 %v182_v34, %v486_v10  ;;  %v191_v43 = vadd.f32 %v183_v20, %v486_v10 }
  0x97   :  { %vm139_vm4 = vcmp.ge.f32.partialorder %v135_v41, 0.5  ;;  %vm140_vm5 = vcmp.ge.f32.partialorder %v136_v18, 0.5  ;;  %vm141_vm6 = vcmp.ge.f32.partialorder %v137_v19, 0.5  ;;  %v192_v24 = vadd.f32 %v184_v15, %v486_v10 }
  0x98   :  { %vm142_vm7 = vcmp.ge.f32.partialorder %v138_v21, 0.5  ;;  %v300_v39 = vsel %vm139_vm4, 1.0, %v337_v55  ;;  %v301_v23 = vsel %vm140_vm5, 1.0, %v337_v55  ;;  %v302_v26 = vsel %vm141_vm6, 1.0, %v337_v55 }
  0x99   :  { %v303_v27 = vsel %vm142_vm7, 1.0, %v337_v55  ;;  %304 = vst [vmem:[%s633_s3 + $0x20] sm:$0xff] %v300_v39  ;;  %305 = vst [vmem:[%s633_s3 + $0x28] sm:$0xff] %v301_v23  ;;  %v156_v28 = vsub.f32 1.0, %v300_v39  ;;  %v157_v29 = vsub.f32 1.0, %v301_v23  ;;  %v158_v32 = vsub.f32 1.0, %v302_v26 }
  0x9a   :  { %306 = vst [vmem:[%s633_s3 + $0x30] sm:$0xff] %v302_v26  ;;  %307 = vst [vmem:[%s633_s3 + $0x38] sm:$0xff] %v303_v27  ;;  %v159_v33 = vsub.f32 1.0, %v303_v27  ;;  %v188_v53 = vadd.f32 %v180_v40, %v456_v47  ;;  %v193_v54 = vadd.f32 %v189_v22, %v185_v17  ;;  %v194_v56 = vadd.f32 %v190_v30, %v186_v25 }
  0x9b   :  { %v160_v57 = vmul.f32 %v156_v28, %v135_v41  ;;  %v161_v58 = vmul.f32 %v157_v29, %v136_v18  ;;  %v162_v61 = vmul.f32 %v158_v32, %v137_v19  ;;  %v195_v62 = vadd.f32 %v191_v43, %v187_v42 }
  0x9c   :  { %v163_v63 = vmul.f32 %v159_v33, %v138_v21  ;;  %v196_v0 = vadd.f32 %v192_v24, %v188_v53  ;;  %v243_v2 = vmul.f32 %v235_v45, %v458_v48  ;;  %v244_v3 = vmul.f32 %v236_v46, %v458_v48 }
  0x9d   :  { %v197_v4 = vmul.f32 0.2, %v160_v57  ;;  %v198_v5 = vmul.f32 0.2, %v161_v58  ;;  %v199_v6 = vmul.f32 0.2, %v162_v61  ;;  %v247_v7 = vmul.f32 %v239_v51, %v476_v1 }
  0x9e   :  { %v200_v8 = vmul.f32 0.2, %v163_v63  ;;  %v245_v9 = vmul.f32 %v237_v49, %v458_v48  ;;  %v246_v45 = vmul.f32 %v238_v50, %v458_v48  ;;  %v248_v31 = vmul.f32 %v240_v52, %v476_v1 }
  0x9f   :  { %v201_v46 = vadd.f32 %v197_v4, %v193_v54  ;;  %v202_v11 = vadd.f32 %v198_v5, %v194_v56  ;;  %v203_v12 = vadd.f32 %v199_v6, %v195_v62  ;;  %v249_v51 = vmul.f32 %v241_v59, %v476_v1 }
  0xa0   :  { %v204_v13 = vadd.f32 %v200_v8, %v196_v0  ;;  %v250_v49 = vmul.f32 %v242_v60, %v476_v1  ;;  %v251_v34 = vadd.f32 %v243_v2, %v456_v47  ;;  %v252_v36 = vadd.f32 %v244_v3, %v456_v47 }
  0xa1   :  { %vm205_vm8 = vcmp.ge.f32.partialorder %v201_v46, 0.5  ;;  %vm206_vm9 = vcmp.ge.f32.partialorder %v202_v11, 0.5  ;;  %vm207_vm10 = vcmp.ge.f32.partialorder %v203_v12, 0.5  ;;  %v255_v37 = vadd.f32 %v247_v7, %v486_v10 }
  0xa2   :  { %vm208_vm11 = vcmp.ge.f32.partialorder %v204_v13, 0.5  ;;  %v312_v48 = vsel %vm205_vm8, 1.0, %v337_v55  ;;  %v313_v50 = vsel %vm206_vm9, 1.0, %v337_v55  ;;  %v314_v52 = vsel %vm207_vm10, 1.0, %v337_v55 }
  0xa3   :  { %v315_v59 = vsel %vm208_vm11, 1.0, %v337_v55  ;;  %316 = vst [vmem:[%s633_s3 + $0x40] sm:$0xff] %v312_v48  ;;  %317 = vst [vmem:[%s633_s3 + $0x48] sm:$0xff] %v313_v50  ;;  %v222_v44 = vsub.f32 1.0, %v312_v48  ;;  %v223_v60 = vsub.f32 1.0, %v313_v50  ;;  %v224_v1 = vsub.f32 1.0, %v314_v52 }
  0xa4   :  { %318 = vst [vmem:[%s633_s3 + $0x50] sm:$0xff] %v314_v52  ;;  %319 = vst [vmem:[%s633_s3 + $0x58] sm:$0xff] %v315_v59  ;;  %v225_v20 = vsub.f32 1.0, %v315_v59  ;;  %v256_v35 = vadd.f32 %v248_v31, %v486_v10  ;;  %v257_v14 = vadd.f32 %v249_v51, %v486_v10  ;;  %v258_v38 = vadd.f32 %v250_v49, %v486_v10 }
  0xa5   :  { %v226_v15 = vmul.f32 %v222_v44, %v201_v46  ;;  %v227_v16 = vmul.f32 %v223_v60, %v202_v11  ;;  %v228_v40 = vmul.f32 %v224_v1, %v203_v12  ;;  %v253_v17 = vadd.f32 %v245_v9, %v456_v47 }
  0xa6   :  { %v229_v25 = vmul.f32 %v225_v20, %v204_v13  ;;  %v254_v41 = vadd.f32 %v246_v45, %v456_v47  ;;  %v259_v18 = vadd.f32 %v255_v37, %v251_v34  ;;  %v260_v19 = vadd.f32 %v256_v35, %v252_v36 }
  0xa7   :  { %v261_v42 = vadd.f32 %v257_v14, %v253_v17  ;;  %v263_v21 = vmul.f32 0.2, %v226_v15  ;;  %v264_v22 = vmul.f32 0.2, %v227_v16  ;;  %v265_v30 = vmul.f32 0.2, %v228_v40 }
  0xa8   :  { %v262_v43 = vadd.f32 %v258_v38, %v254_v41  ;;  %v266_v24 = vmul.f32 0.2, %v229_v25 }
  0xa9   :  { %v267_v39 = vadd.f32 %v263_v21, %v259_v18  ;;  %v268_v23 = vadd.f32 %v264_v22, %v260_v19  ;;  %v269_v26 = vadd.f32 %v265_v30, %v261_v42 }
  0xaa   :  { %v270_v10 = vadd.f32 %v266_v24, %v262_v43 }
  0xab   :  { %vm271_vm12 = vcmp.ge.f32.partialorder %v267_v39, 0.5  ;;  %vm272_vm13 = vcmp.ge.f32.partialorder %v268_v23, 0.5  ;;  %vm273_vm14 = vcmp.ge.f32.partialorder %v269_v26, 0.5 }
  0xac   :  { %vm274_vm15 = vcmp.ge.f32.partialorder %v270_v10, 0.5  ;;  %v324_v27 = vsel %vm271_vm12, 1.0, %v337_v55  ;;  %v325_v47 = vsel %vm272_vm13, 1.0, %v337_v55  ;;  %v326_v28 = vsel %vm273_vm14, 1.0, %v337_v55 }
  0xad   :  { %v327_v29 = vsel %vm274_vm15, 1.0, %v337_v55  ;;  %328 = vst [vmem:[%s633_s3 + $0x60] sm:$0xff] %v324_v27  ;;  %329 = vst [vmem:[%s633_s3 + $0x68] sm:$0xff] %v325_v47 }
  0xae   :  { %330 = vst [vmem:[%s633_s3 + $0x70] sm:$0xff] %v326_v28  ;;  %331 = vst [vmem:[%s633_s3 + $0x78] sm:$0xff] %v327_v29 }

// kernel: cell_forward.6
= control target key start
LH: loop header
LB: loop body
LE: loop exit
PB: predicated region body
PF: predicated region fallthrough
CT: control target
= control target key end

     0   :  { %s830_s15 = smov 0   ;;  %s832_s16 = smov 0   ;;  %s899_s0 = inlined_call_operand.vmem [shape: bf16[8,80], index: 0, kind: input, shape index: {}]   ;;  %s900_s1 = inlined_call_operand.vmem [shape: bf16[4,80,512], index: 1, kind: input, shape index: {}]   ;;  %s901_s2 = inlined_call_operand.vmem [shape: bf16[4,8,512], index: 2, kind: output, shape index: {0}]   ;;  %s902_s3 = inlined_call_operand.vmem [shape: f32[4,1,8,128], index: 3, kind: output, shape index: {1}]   ;;  %s903_s4 = inlined_call_operand.vmem [shape: f32[4,1,8,128], index: 4, kind: output, shape index: {2}]  }
   0x1   :  { %s834_s17 = smov 0  }
   0x2 LB: > { %s27_s18 = sadd.s32 1, %s798_s16  ;;  %p689_p0 = scmp.ge.s32.totalorder %s802_s17, 1  ;;  %s802_s17 = sphi %s834_s17, %s15_s17   ;;  %s798_s16 = sphi %s832_s16, %s905_s16   ;;  %s794_s15 = sphi %s830_s15, %s904_s15  }
   0x3   : > { %p29_p1 = scmp.ge.s32.totalorder %s27_s18, 4  ;;  %p192_p2 = scmp.lt.s32.totalorder %s802_s17, 5 }
   0x5   : > { %s907_s18 = smov (%p29_p1, %s27_s18), 0  ;;  %p193_p3 = pnand %p689_p0, %p192_p2 }
   0x6   : > { %p241_p4 = scmp.lt.s32.totalorder (!%p193_p3), %s794_s15, 3  ;;  %v804_v0 = vmov (!%p193_p3), 0   ;;  %v275_v21 = vld [vmem:[%s899_s0] sm:$0xf] (!%p193_p3)  ;;  %vm396_vm0 = vcmask (!%p193_p3), 654336  }
   0x7   : > { %196 = sbr.rel (%p193_p3) target bundleno = 263 (0x107), region = 28  ;;  %432 = vmatprep.mubr.bf16.mxu0 (!%p193_p3), %v804_v0  ;;  %473 = vmatprep.mubr.bf16.mxu1 (!%p193_p3), %v804_v0 }
   0xe   : > { %s909_s15 = smov (!%p241_p4, %s794_s15), 3 }
   0xf   : > { %s724_s19 = smul.u32 160, %s909_s15  ;;  %s721_s25 = sshll.u32 %s909_s15, 4 }
  0x10   : > { %s258_s28 = scalar_lea.vmem %s901_s2, %s721_s25  ;;  %s693_s29 = sshll.u32 %s909_s15, 3 }
  0x11   : > { %s854_s22 = scalar_lea.vmem %s900_s1, %s724_s19  ;;  %s266_s6 = scalar_lea.vmem %s902_s3, %s693_s29 }
  0x12   : > { %v750_v1 = vld [vmem:[%s854_s22 + $0x4] ss:$16 sps:$4 sm:$0xff]   ;;  %v752_v2 = vld [vmem:[%s854_s22 + $0xc] ss:$16 sps:$4 sm:$0xff]   ;;  %v754_v3 = vld [vmem:[%s854_s22] ss:$16 sps:$4 sm:$0xff]   ;;  %s273_s9 = scalar_lea.vmem %s903_s4, %s693_s29 }
  0x13   : > { %400 = vmatprep.subr.bf16.mxu0 %v750_v1  ;;  %v755_v4 = vld [vmem:[%s854_s22 + $0x8] ss:$16 sps:$4 sm:$0xff]   ;;  %441 = vmatprep.subr.bf16.mxu1 %v752_v2  ;;  %v756_v5 = vld [vmem:[%s854_s22 + $0x24] ss:$16 sps:$4 sm:$0xff]   ;;  %v758_v6 = vld [vmem:[%s854_s22 + $0x2c] ss:$16 sps:$4 sm:$0xff]  }
  0x14   : > { %401 = vmatpush1.bf16.msra.mxu0 %v754_v3  ;;  %442 = vmatpush1.bf16.msra.mxu1 %v755_v4  ;;  %v760_v7 = vld [vmem:[%s854_s22 + $0x20] ss:$16 sps:$4 sm:$0xff]   ;;  %v761_v8 = vld [vmem:[%s854_s22 + $0x28] ss:$16 sps:$4 sm:$0xff]   ;;  %v762_v9 = vld [vmem:[%s854_s22 + $0x44] ss:$16 sps:$4 sm:$0xff]  }
  0x15   : > { %402 = vmatprep.subr.bf16.mxu0 %v756_v5  ;;  %443 = vmatprep.subr.bf16.mxu1 %v758_v6  ;;  %v764_v10 = vld [vmem:[%s854_s22 + $0x4c] ss:$16 sps:$4 sm:$0xff]   ;;  %v766_v11 = vld [vmem:[%s854_s22 + $0x40] ss:$16 sps:$4 sm:$0xff]   ;;  %v767_v12 = vld [vmem:[%s854_s22 + $0x48] ss:$16 sps:$4 sm:$0xff]  }
  0x16   : > { %v768_v13 = vld [vmem:[%s854_s22 + $0x64] ss:$16 sps:$4 sm:$0xff]   ;;  %v770_v14 = vld [vmem:[%s854_s22 + $0x6c] ss:$16 sps:$4 sm:$0xff]   ;;  %v772_v15 = vld [vmem:[%s854_s22 + $0x60] ss:$16 sps:$4 sm:$0xff]  }
  0x17   : > { %v773_v16 = vld [vmem:[%s854_s22 + $0x68] ss:$16 sps:$4 sm:$0xff]   ;;  %v774_v17 = vld [vmem:[%s854_s22 + $0x84] ss:$16 sps:$4 sm:$0xff]   ;;  %v776_v18 = vld [vmem:[%s854_s22 + $0x8c] ss:$16 sps:$4 sm:$0xff]  }
  0x18   : > { %403 = vmatpush1.bf16.msra.mxu0 %v760_v7  ;;  %444 = vmatpush1.bf16.msra.mxu1 %v761_v8  ;;  %v778_v19 = vld [vmem:[%s854_s22 + $0x80] ss:$16 sps:$4 sm:$0xff]   ;;  %v779_v20 = vld [vmem:[%s854_s22 + $0x88] ss:$16 sps:$4 sm:$0xff]  }
  0x19   : > { %404 = vmatprep.subr.bf16.mxu0 %v762_v9  ;;  %445 = vmatprep.subr.bf16.mxu1 %v764_v10 }
  0x1c   : > { %405 = vmatpush1.bf16.msra.mxu0 %v766_v11  ;;  %446 = vmatpush1.bf16.msra.mxu1 %v767_v12 }
  0x1d   : > { %406 = vmatprep.subr.bf16.mxu0 %v768_v13  ;;  %447 = vmatprep.subr.bf16.mxu1 %v770_v14 }
  0x20   : > { %407 = vmatpush1.bf16.msra.mxu0 %v772_v15  ;;  %448 = vmatpush1.bf16.msra.mxu1 %v773_v16 }
  0x21   : > { %408 = vmatprep.subr.bf16.mxu0 %v774_v17  ;;  %449 = vmatprep.subr.bf16.mxu1 %v776_v18 }
  0x24   : > { %409 = vmatpush1.bf16.msra.mxu0 %v778_v19  ;;  %450 = vmatpush1.bf16.msra.mxu1 %v779_v20 }
  0x27   : > { %715 = vmatmul.mubr.msk.bf16.vlgmr.msra.gmra.mrb[0].mxu0 %vm396_vm0, %v275_v21  ;;  %716 = vmatmul.mubr.msk.bf16.vlgmr.msra.gmra.mrb[0].mxu1 %vm396_vm0, %v275_v21 }
  0xfa   : > { %v434_v22 = vpop.f32.mrb[0].mxu0  ;;  %v475_v23 = vpop.f32.mrb[0].mxu1 }
  0xfb   : > { %v482_v24 = vpack.c.bf16 %v434_v22, %v434_v22  ;;  %v484_v25 = vpack.c.bf16 %v475_v23, %v475_v23  ;;  %v436_v26 = vpop.f32.mrb[1].mxu0  ;;  %v477_v27 = vpop.f32.mrb[1].mxu1 }
  0xfc   : > { %v483_v28 = vpack.c.bf16 %v436_v26, %v436_v26  ;;  %v722_v29 = vpack.c.bf16 %v436_v26, %v434_v22  ;;  %v485_v30 = vpack.c.bf16 %v477_v27, %v477_v27  ;;  %v723_v31 = vpack.c.bf16 %v477_v27, %v475_v23  ;;  %v438_v32 = vpop.f32.mrb[2].mxu0  ;;  %v479_v33 = vpop.f32.mrb[2].mxu1 }
  0xfd   : > { %v500_v34 = vunpack.c.l.bf16 %v482_v24  ;;  %v502_v35 = vunpack.c.l.bf16 %v484_v25  ;;  %v439_v36 = vpop.f32.mrb[3].mxu0  ;;  %v480_v37 = vpop.f32.mrb[3].mxu1 }
  0xfe   : > { %498 = vst [vmem:[%s258_s28] sm:$0xff] %v722_v29  ;;  %v501_v38 = vunpack.c.l.bf16 %v483_v28  ;;  %499 = vst [vmem:[%s258_s28 + $0x8] sm:$0xff] %v723_v31  ;;  %v503_v39 = vunpack.c.l.bf16 %v485_v30 }
  0xff   : > { %v504_v40 = vmul.f32 %v500_v34, %v500_v34  ;;  %v506_v41 = vmul.f32 %v502_v35, %v502_v35 }
 0x100   : > { %v505_v42 = vmul.f32 %v501_v38, %v501_v38  ;;  %v508_v43 = vadd.f32 %v501_v38, %v500_v34  ;;  %v507_v44 = vmul.f32 %v503_v39, %v503_v39  ;;  %v509_v45 = vadd.f32 %v503_v39, %v502_v35 }
 0x102   : > { %v512_v46 = vadd.f32 %v505_v42, %v504_v40  ;;  %v510_v47 = vadd.f32 %v509_v45, %v508_v43  ;;  %v513_v48 = vadd.f32 %v507_v44, %v506_v41 }
 0x104   : > { %511 = vst [vmem:[%s266_s6] sm:$0xff] %v510_v47  ;;  %v514_v49 = vadd.f32 %v513_v48, %v512_v46 }
 0x106   : > { %515 = vst [vmem:[%s273_s9] sm:$0xff] %v514_v49 }
 0x107 PF: > { %s15_s17 = sadd.s32 1, %s802_s17   ;;  %s904_s15 = smov %s798_s16 }
 0x108   : > { %p12_p5 = scmp.ge.s32.totalorder %s15_s17, 6   ;;  %s905_s16 = smov %s907_s18 }
 0x10a   :  { %14 = sbr.rel (!%p12_p5) target bundleno = 2 (0x2), region = 82 }

// kernel: cell_forward.7
= control target key start
LH: loop header
LB: loop body
LE: loop exit
PB: predicated region body
PF: predicated region fallthrough
CT: control target
= control target key end

     0   :  { %v277_v0 = vmov 0   ;;  %v278_v57 = vmov 0.0   ;;  %s453_s1 = inlined_call_operand.vmem [shape: f32[8,1], index: 1, kind: input, shape index: {}]   ;;  %s454_s2 = inlined_call_operand.vmem [shape: f32[8,1], index: 2, kind: input, shape index: {}]   ;;  %s455_s0 = inlined_call_operand.vmem [shape: bf16[4,8,512], index: 0, kind: input, shape index: {}]   ;;  %s456_s3 = inlined_call_operand.vmem [shape: f32[4,8,512], index: 3, kind: output, shape index: {}]  }
   0x1   :  { %276 = vset.pattern.permute.xlu0 %v277_v0  ;;  %v14_v1 = vld [vmem:[%s453_s1] sm:$0xff]  ;;  %v27_v4 = vld [vmem:[%s455_s0 + $0x8] sm:$0xff]  ;;  %v244_v5 = vld [vmem:[%s455_s0 + $0x10] sm:$0xff] }
   0x2   :  { %17 = vperm.xlu0 %276, %v14_v1   ;;  %v20_v2 = vld [vmem:[%s454_s2] sm:$0xff]  ;;  %v245_v6 = vld [vmem:[%s455_s0 + $0x18] sm:$0xff]  ;;  %v30_v9 = vunpack.c.l.bf16 %v27_v4  ;;  %v31_v10 = vunpack.c.h.bf16 %v27_v4  ;;  %v325_v12 = vld [vmem:[%s455_s0 + $0x28] sm:$0xff]  ;;  %v79_v14 = vunpack.c.l.bf16 %v244_v5  ;;  %v80_v15 = vunpack.c.h.bf16 %v244_v5 }
   0x3   :  { %v26_v3 = vld [vmem:[%s455_s0] sm:$0xff]  ;;  %v81_v16 = vunpack.c.l.bf16 %v245_v6  ;;  %v82_v17 = vunpack.c.h.bf16 %v245_v6  ;;  %v332_v18 = vld [vmem:[%s455_s0 + $0x30] sm:$0xff]  ;;  %v137_v21 = vunpack.c.l.bf16 %v325_v12  ;;  %v138_v22 = vunpack.c.h.bf16 %v325_v12  ;;  %v355_v36 = vld [vmem:[%s455_s0 + $0x38] sm:$0xff] }
   0x4   :  { %v28_v7 = vunpack.c.l.bf16 %v26_v3  ;;  %v29_v8 = vunpack.c.h.bf16 %v26_v3  ;;  %v320_v11 = vld [vmem:[%s455_s0 + $0x20] sm:$0xff]  ;;  %v191_v31 = vunpack.c.l.bf16 %v332_v18  ;;  %v192_v40 = vunpack.c.h.bf16 %v332_v18 }
   0x5   :  { %v135_v19 = vunpack.c.l.bf16 %v320_v11  ;;  %v136_v20 = vunpack.c.h.bf16 %v320_v11  ;;  %v193_v47 = vunpack.c.l.bf16 %v355_v36  ;;  %v194_v48 = vunpack.c.h.bf16 %v355_v36 }
   0x6   :  { %23 = vperm.xlu0 %276, %v20_v2  }
  0x81   :  { %v327_v13 = vpop.permute.xlu0 %17 }
  0x82   :  { %v32_v23 = vmul.f32 %v28_v7, %v327_v13  ;;  %v33_v24 = vmul.f32 %v29_v8, %v327_v13  ;;  %v34_v25 = vmul.f32 %v30_v9, %v327_v13  ;;  %v35_v26 = vmul.f32 %v31_v10, %v327_v13 }
  0x83   :  { %v83_v28 = vmul.f32 %v79_v14, %v327_v13  ;;  %v84_v29 = vmul.f32 %v80_v15, %v327_v13  ;;  %v85_v30 = vmul.f32 %v81_v16, %v327_v13  ;;  %v86_v45 = vmul.f32 %v82_v17, %v327_v13 }
  0x84   :  { %v139_v46 = vmul.f32 %v135_v19, %v327_v13  ;;  %v140_v4 = vmul.f32 %v136_v20, %v327_v13  ;;  %v141_v5 = vmul.f32 %v137_v21, %v327_v13  ;;  %v142_v20 = vmul.f32 %v138_v22, %v327_v13 }
  0x85   :  { %v342_v27 = vpop.permute.xlu0 %23  ;;  %v195_v21 = vmul.f32 %v191_v31, %v327_v13 }
  0x86   :  { %v36_v32 = vadd.f32 %v32_v23, %v342_v27  ;;  %v37_v33 = vadd.f32 %v33_v24, %v342_v27  ;;  %v38_v34 = vadd.f32 %v34_v25, %v342_v27  ;;  %v39_v35 = vadd.f32 %v35_v26, %v342_v27 }
  0x87   :  { %v87_v37 = vadd.f32 %v83_v28, %v342_v27  ;;  %v88_v38 = vadd.f32 %v84_v29, %v342_v27  ;;  %v89_v39 = vadd.f32 %v85_v30, %v342_v27  ;;  %v90_v53 = vadd.f32 %v86_v45, %v342_v27 }
  0x88   :  { %v40_v41 = vrot.slane %v36_v32, 4  ;;  %v41_v42 = vrot.slane %v37_v33, 4  ;;  %v42_v43 = vrot.slane %v38_v34, 4  ;;  %v43_v44 = vrot.slane %v39_v35, 4 }
  0x89   :  { %v91_v54 = vrot.slane %v87_v37, 4  ;;  %v92_v55 = vrot.slane %v88_v38, 4  ;;  %v93_v56 = vrot.slane %v89_v39, 4  ;;  %v94_v2 = vrot.slane %v90_v53, 4 }
  0x8a   :  { %v44_v49 = vadd.f32 %v40_v41, %v36_v32  ;;  %v45_v50 = vadd.f32 %v41_v42, %v37_v33  ;;  %v46_v51 = vadd.f32 %v42_v43, %v38_v34  ;;  %v47_v52 = vadd.f32 %v43_v44, %v39_v35 }
  0x8b   :  { %v95_v3 = vadd.f32 %v91_v54, %v87_v37  ;;  %v96_v10 = vadd.f32 %v92_v55, %v88_v38  ;;  %v97_v11 = vadd.f32 %v93_v56, %v89_v39  ;;  %v143_v14 = vadd.f32 %v139_v46, %v342_v27 }
  0x8c   :  { %vm52_vm0 = vcmp.ge.f32.partialorder %v44_v49, 0.5  ;;  %vm53_vm1 = vcmp.ge.f32.partialorder %v45_v50, 0.5  ;;  %vm54_vm2 = vcmp.ge.f32.partialorder %v46_v51, 0.5  ;;  %vm55_vm3 = vcmp.ge.f32.partialorder %v47_v52, 0.5 }
  0x8d   :  { %v240_v58 = vsel %vm52_vm0, 1.0, %v278_v57  ;;  %v241_v59 = vsel %vm53_vm1, 1.0, %v278_v57  ;;  %v242_v60 = vsel %vm54_vm2, 1.0, %v278_v57  ;;  %v243_v61 = vsel %vm55_vm3, 1.0, %v278_v57 }
  0x8e   :  { %64 = vst [vmem:[%s456_s3] sm:$0xff] %v240_v58  ;;  %65 = vst [vmem:[%s456_s3 + $0x8] sm:$0xff] %v241_v59  ;;  %v68_v62 = vsub.f32 1.0, %v240_v58  ;;  %v69_v63 = vsub.f32 1.0, %v241_v59  ;;  %v70_v0 = vsub.f32 1.0, %v242_v60  ;;  %v71_v1 = vsub.f32 1.0, %v243_v61 }
  0x8f   :  { %66 = vst [vmem:[%s456_s3 + $0x10] sm:$0xff] %v242_v60  ;;  %67 = vst [vmem:[%s456_s3 + $0x18] sm:$0xff] %v243_v61  ;;  %v144_v15 = vadd.f32 %v140_v4, %v342_v27  ;;  %v145_v23 = vadd.f32 %v141_v5, %v342_v27  ;;  %v98_v24 = vadd.f32 %v94_v2, %v90_v53  ;;  %v147_v34 = vrot.slane %v143_v14, 4 }
  0x90   :  { %v72_v6 = vmul.f32 %v68_v62, %v44_v49  ;;  %v73_v7 = vmul.f32 %v69_v63, %v45_v50  ;;  %v74_v8 = vmul.f32 %v70_v0, %v46_v51  ;;  %v75_v9 = vmul.f32 %v71_v1, %v47_v52 }
  0x91   :  { %v196_v30 = vmul.f32 %v192_v40, %v327_v13  ;;  %v146_v33 = vadd.f32 %v142_v20, %v342_v27  ;;  %v148_v35 = vrot.slane %v144_v15, 4  ;;  %v149_v37 = vrot.slane %v145_v23, 4 }
  0x92   :  { %v99_v16 = vmul.f32 0.2, %v72_v6  ;;  %v100_v17 = vmul.f32 0.2, %v73_v7  ;;  %v101_v19 = vmul.f32 0.2, %v74_v8  ;;  %v197_v43 = vmul.f32 %v193_v47, %v327_v13 }
  0x93   :  { %v102_v25 = vmul.f32 0.2, %v75_v9  ;;  %v150_v42 = vrot.slane %v146_v33, 4  ;;  %v199_v44 = vadd.f32 %v195_v21, %v342_v27  ;;  %v151_v50 = vadd.f32 %v147_v34, %v143_v14 }
  0x94   :  { %v103_v26 = vadd.f32 %v99_v16, %v95_v3  ;;  %v104_v28 = vadd.f32 %v100_v17, %v96_v10  ;;  %v105_v29 = vadd.f32 %v101_v19, %v97_v11  ;;  %v152_v52 = vadd.f32 %v148_v35, %v144_v15 }
  0x95   :  { %v106_v32 = vadd.f32 %v102_v25, %v98_v24  ;;  %v153_v53 = vadd.f32 %v149_v37, %v145_v23  ;;  %v200_v54 = vadd.f32 %v196_v30, %v342_v27  ;;  %v201_v59 = vadd.f32 %v197_v43, %v342_v27 }
  0x96   :  { %vm107_vm4 = vcmp.ge.f32.partialorder %v103_v26, 0.5  ;;  %vm108_vm5 = vcmp.ge.f32.partialorder %v104_v28, 0.5  ;;  %vm109_vm6 = vcmp.ge.f32.partialorder %v105_v29, 0.5  ;;  %v154_v60 = vadd.f32 %v150_v42, %v146_v33 }
  0x97   :  { %vm110_vm7 = vcmp.ge.f32.partialorder %v106_v32, 0.5  ;;  %v246_v12 = vsel %vm107_vm4, 1.0, %v278_v57  ;;  %v247_v18 = vsel %vm108_vm5, 1.0, %v278_v57  ;;  %v248_v22 = vsel %vm109_vm6, 1.0, %v278_v57 }
  0x98   :  { %v249_v31 = vsel %vm110_vm7, 1.0, %v278_v57  ;;  %250 = vst [vmem:[%s456_s3 + $0x20] sm:$0xff] %v246_v12  ;;  %251 = vst [vmem:[%s456_s3 + $0x28] sm:$0xff] %v247_v18  ;;  %v124_v38 = vsub.f32 1.0, %v246_v12  ;;  %v125_v39 = vsub.f32 1.0, %v247_v18  ;;  %v126_v40 = vsub.f32 1.0, %v248_v22 }
  0x99   :  { %252 = vst [vmem:[%s456_s3 + $0x30] sm:$0xff] %v248_v22  ;;  %253 = vst [vmem:[%s456_s3 + $0x38] sm:$0xff] %v249_v31  ;;  %v127_v41 = vsub.f32 1.0, %v249_v31  ;;  %v198_v47 = vmul.f32 %v194_v48, %v327_v13  ;;  %v203_v3 = vrot.slane %v199_v44, 4  ;;  %v204_v4 = vrot.slane %v200_v54, 4 }
  0x9a   :  { %v128_v45 = vmul.f32 %v124_v38, %v103_v26  ;;  %v129_v46 = vmul.f32 %v125_v39, %v104_v28  ;;  %v130_v49 = vmul.f32 %v126_v40, %v105_v29  ;;  %v205_v5 = vrot.slane %v201_v59, 4 }
  0x9b   :  { %v131_v51 = vmul.f32 %v127_v41, %v106_v32  ;;  %v202_v2 = vadd.f32 %v198_v47, %v342_v27  ;;  %v207_v17 = vadd.f32 %v203_v3, %v199_v44  ;;  %v208_v19 = vadd.f32 %v204_v4, %v200_v54 }
  0x9c   :  { %v155_v55 = vmul.f32 0.2, %v128_v45  ;;  %v156_v56 = vmul.f32 0.2, %v129_v46  ;;  %v157_v58 = vmul.f32 0.2, %v130_v49  ;;  %v209_v23 = vadd.f32 %v205_v5, %v201_v59 }
  0x9d   :  { %v158_v61 = vmul.f32 0.2, %v131_v51  ;;  %v206_v10 = vrot.slane %v202_v2, 4 }
  0x9e   :  { %v159_v62 = vadd.f32 %v155_v55, %v151_v50  ;;  %v160_v63 = vadd.f32 %v156_v56, %v152_v52  ;;  %v161_v0 = vadd.f32 %v157_v58, %v153_v53 }
  0x9f   :  { %v162_v1 = vadd.f32 %v158_v61, %v154_v60  ;;  %v210_v21 = vadd.f32 %v206_v10, %v202_v2 }
  0xa0   :  { %vm163_vm8 = vcmp.ge.f32.partialorder %v159_v62, 0.5  ;;  %vm164_vm9 = vcmp.ge.f32.partialorder %v160_v63, 0.5  ;;  %vm165_vm10 = vcmp.ge.f32.partialorder %v161_v0, 0.5 }
  0xa1   :  { %vm166_vm11 = vcmp.ge.f32.partialorder %v162_v1, 0.5  ;;  %v256_v6 = vsel %vm163_vm8, 1.0, %v278_v57  ;;  %v257_v7 = vsel %vm164_vm9, 1.0, %v278_v57  ;;  %v258_v36 = vsel %vm165_vm10, 1.0, %v278_v57 }
  0xa2   :  { %v259_v13 = vsel %vm166_vm11, 1.0, %v278_v57  ;;  %260 = vst [vmem:[%s456_s3 + $0x40] sm:$0xff] %v256_v6  ;;  %261 = vst [vmem:[%s456_s3 + $0x48] sm:$0xff] %v257_v7  ;;  %v180_v27 = vsub.f32 1.0, %v256_v6  ;;  %v181_v48 = vsub.f32 1.0, %v257_v7  ;;  %v182_v8 = vsub.f32 1.0, %v258_v36 }
  0xa3   :  { %262 = vst [vmem:[%s456_s3 + $0x50] sm:$0xff] %v258_v36  ;;  %263 = vst [vmem:[%s456_s3 + $0x58] sm:$0xff] %v259_v13  ;;  %v183_v9 = vsub.f32 1.0, %v259_v13 }
  0xa4   :  { %v184_v11 = vmul.f32 %v180_v27, %v159_v62  ;;  %v185_v14 = vmul.f32 %v181_v48, %v160_v63  ;;  %v186_v15 = vmul.f32 %v182_v8, %v161_v0 }
  0xa5   :  { %v187_v16 = vmul.f32 %v183_v9, %v162_v1 }
  0xa6   :  { %v211_v24 = vmul.f32 0.2, %v184_v11  ;;  %v212_v25 = vmul.f32 0.2, %v185_v14  ;;  %v213_v20 = vmul.f32 0.2, %v186_v15 }
  0xa7   :  { %v214_v26 = vmul.f32 0.2, %v187_v16 }
  0xa8   :  { %v215_v28 = vadd.f32 %v211_v24, %v207_v17  ;;  %v216_v29 = vadd.f32 %v212_v25, %v208_v19  ;;  %v217_v30 = vadd.f32 %v213_v20, %v209_v23 }
  0xa9   :  { %v218_v32 = vadd.f32 %v214_v26, %v210_v21 }
  0xaa   :  { %vm219_vm12 = vcmp.ge.f32.partialorder %v215_v28, 0.5  ;;  %vm220_vm13 = vcmp.ge.f32.partialorder %v216_v29, 0.5  ;;  %vm221_vm14 = vcmp.ge.f32.partialorder %v217_v30, 0.5 }
  0xab   :  { %vm222_vm15 = vcmp.ge.f32.partialorder %v218_v32, 0.5  ;;  %v266_v33 = vsel %vm219_vm12, 1.0, %v278_v57  ;;  %v267_v34 = vsel %vm220_vm13, 1.0, %v278_v57  ;;  %v268_v35 = vsel %vm221_vm14, 1.0, %v278_v57 }
  0xac   :  { %v269_v37 = vsel %vm222_vm15, 1.0, %v278_v57  ;;  %270 = vst [vmem:[%s456_s3 + $0x60] sm:$0xff] %v266_v33  ;;  %271 = vst [vmem:[%s456_s3 + $0x68] sm:$0xff] %v267_v34 }
  0xad   :  { %272 = vst [vmem:[%s456_s3 + $0x70] sm:$0xff] %v268_v35  ;;  %273 = vst [vmem:[%s456_s3 + $0x78] sm:$0xff] %v269_v37 }

</bundles_post_ra>
